<compile_context>
chip_gen: v7x
topology: tpu7x:2x2x1
jax: 0.10.0
libtpu: 0.0.40
codegen_flags: <defaults>
</compile_context>

<pallas_src>
import jax
import jax.numpy as jnp
from jax import lax
from jax.experimental import pallas as pl
from jax.experimental.pallas import tpu as pltpu

KSIZE = 5                 # conv kernel size
PAD = (KSIZE - 1) // 2    # "same" padding = 2
TAIL = 8                  # zero rows appended so all tap slices stay in bounds


def _round_up(v, m):
    return -(-v // m) * m


def _layouts_for(l0):
    """Per-block (length, stride, offset) of the flat strided-halo layout."""
    l1, l2 = l0 // 2, l0 // 4
    d0, d1, d2 = 14, 6, 2          # data offsets; d_{j+1} = (d_j - 2) / 2
    s0 = _round_up(max(d0 + l0 + 2, 2 * (d1 + l1 + 2), 4 * (d2 + l2 + 2)), 8)
    return ((l0, s0, d0), (l1, s0 // 2, d1), (l2, s0 // 4, d2))


# ----------------------------------------------------------------------------
# Fused conv stack kernel
# ----------------------------------------------------------------------------
def _conv_bn_relu_pool(h, w_ref, b_ref, *, length, stride, offset):
    """One Conv+BN+ReLU+Pool block on the flat strided-halo activation.

    h:      (R, Cin) bf16, R = nb*stride; example b's data in rows
            [b*stride + offset, b*stride + offset + length), zeros elsewhere.
    w_ref:  (KSIZE, Cin, Cout) bf16 BN-folded conv weight.
    b_ref:  (1, Cout) f32 BN-folded bias.
    returns (R // 2, Cout) bf16 in the (stride/2, (offset-2)/2) layout.
    """
    r, cin = h.shape
    cout = w_ref.shape[-1]

    # Conv as 5 accumulated wide-M MXU dots (zeros in the layout = padding).
    hp = jnp.concatenate([h, jnp.zeros((TAIL, cin), h.dtype)], axis=0)
    acc = jnp.dot(hp[0:r, :], w_ref[0], preferred_element_type=jnp.float32)
    for k in range(1, KSIZE):
        acc = acc + jnp.dot(hp[k:k + r, :], w_ref[k],
                            preferred_element_type=jnp.float32)

    # Bias + ReLU, then zero every row that must not survive into the next
    # block (the inter-example padding and the odd row floor-pool drops).
    half = length // 2
    row = lax.broadcasted_iota(jnp.int32, (r, 1), 0) % stride
    keep = (row >= offset - PAD) & (row < offset - PAD + 2 * half)
    y = jnp.where(keep, jnp.maximum(acc + b_ref[...], 0.0), 0.0)

    # MaxPool1d(2): pairwise max over flat row pairs (layout keeps pairs
    # aligned so this is exactly PyTorch floor-mode pooling per example).
    y = jnp.max(y.reshape(r // 2, 2, cout), axis=1)
    return y.astype(jnp.bfloat16)


def _make_fused_conv_kernel(nb, layouts):
    (l1, s1, d1), (l2, s2, d2), (l3, s3, d3) = layouts

    def kernel(x_ref, w1_ref, b1_ref, w2_ref, b2_ref, w3_ref, b3_ref, out_ref):
        cin = x_ref.shape[-1]
        # s1 % 8 == 0 -> merging (nb, s1) into the sublane dim is layout-free.
        h = x_ref[...].reshape(nb * s1, cin)
        h = _conv_bn_relu_pool(h, w1_ref, b1_ref, length=l1, stride=s1, offset=d1)
        h = _conv_bn_relu_pool(h, w2_ref, b2_ref, length=l2, stride=s2, offset=d2)
        h = _conv_bn_relu_pool(h, w3_ref, b3_ref, length=l3, stride=s3, offset=d3)
        out_ref[...] = h.reshape(out_ref.shape)

    return kernel


def _pick_conv_batch_tile(n):
    # keep >= 2 grid steps when possible (megacore); nb=8 stays well inside
    # the 32 MB scoped-VMEM limit even at the real 750-sample length.
    for nb in (8, 4, 2, 1):
        if n % nb == 0 and n // nb >= 2:
            return nb
    return 1


def fused_conv_stack(x_padded, conv_wb, layouts):
    """x_padded: (N, S0, Cin) bf16 already in the block-1 halo layout.
    Returns pooled features (N, S3, 128) bf16 (data rows [0, L3), rest zero)."""
    n, s0, cin = x_padded.shape
    (w1, b1), (w2, b2), (w3, b3) = conv_wb
    c3 = w3.shape[-1]
    s3 = s0 // 8
    nb = _pick_conv_batch_tile(n)

    const3 = lambda i: (0, 0, 0)
    const2 = lambda i: (0, 0)

    return pl.pallas_call(
        _make_fused_conv_kernel(nb, layouts),
        out_shape=jax.ShapeDtypeStruct((n, s3, c3), jnp.bfloat16),
        grid=(n // nb,),
        in_specs=[
            pl.BlockSpec((nb, s0, cin), lambda i: (i, 0, 0)),
            pl.BlockSpec(w1.shape, const3), pl.BlockSpec(b1.shape, const2),
            pl.BlockSpec(w2.shape, const3), pl.BlockSpec(b2.shape, const2),
            pl.BlockSpec(w3.shape, const3), pl.BlockSpec(b3.shape, const2),
        ],
        out_specs=pl.BlockSpec((nb, s3, c3), lambda i: (i, 0, 0)),
        compiler_params=pltpu.CompilerParams(
            dimension_semantics=("parallel",),
            vmem_limit_bytes=32 * 1024 * 1024),
    )(x_padded, w1, b1, w2, b2, w3, b3)


# ----------------------------------------------------------------------------
# MLP: fc1 (parallel N x arbitrary K tiling, f32 accumulator) + ReLU + fc2
# ----------------------------------------------------------------------------
def _mlp_kernel(x_ref, w1_ref, b1_ref, w2_ref, b2_ref, out_ref, acc_ref):
    k = pl.program_id(1)

    @pl.when(k == 0)
    def _():
        acc_ref[...] = jnp.zeros_like(acc_ref)

    acc_ref[...] += jnp.dot(x_ref[...], w1_ref[...],
                            preferred_element_type=jnp.float32)

    @pl.when(k == pl.num_programs(1) - 1)
    def _():
        h = jnp.maximum(acc_ref[...] + b1_ref[...], 0.0)   # fc1 bias + ReLU
        # dropout(p=0.5) is identity in eval mode
        out_ref[...] = (jnp.dot(h.astype(jnp.bfloat16), w2_ref[...],
                                preferred_element_type=jnp.float32)
                        + b2_ref[...])


def _pick_fc1_block_k(s3, hidden):
    # largest divisor d of s3 with >=2 reduction steps and a <=~5 MB bf16
    # weight tile (fits double-buffered on v5e/v6e/v7x).
    max_bytes = 5 * 1024 * 1024
    best = 1
    for d in range(1, s3 + 1):
        if s3 % d == 0 and s3 // d >= 2 and 128 * d * hidden * 2 <= max_bytes:
            best = d
    return 128 * best


def _pick_mlp_batch_tile(n):
    # multiples of 8 (sublane) with >=2 steps so megacore splits fc1; for tiny
    # batches fall back to a single full-N block (HBM-bound anyway).
    for bn in (256, 128, 64, 32, 16, 8):
        if n % bn == 0 and n // bn >= 2:
            return bn
    return n


def mlp(x_flat, w1, b1, w2, b2, *, block_k, block_n):
    n, kdim = x_flat.shape
    hidden = w1.shape[1]
    ncls = w2.shape[1]
    return pl.pallas_call(
        _mlp_kernel,
        out_shape=jax.ShapeDtypeStruct((n, ncls), jnp.float32),
        grid=(n // block_n, kdim // block_k),
        in_specs=[
            pl.BlockSpec((block_n, block_k), lambda i, k: (i, k)),
            pl.BlockSpec((block_k, hidden), lambda i, k: (k, 0)),
            pl.BlockSpec((1, hidden), lambda i, k: (0, 0)),
            pl.BlockSpec((hidden, ncls), lambda i, k: (0, 0)),
            pl.BlockSpec((1, ncls), lambda i, k: (0, 0)),
        ],
        out_specs=pl.BlockSpec((block_n, ncls), lambda i, k: (i, 0)),
        scratch_shapes=[pltpu.VMEM((block_n, hidden), jnp.float32)],
        compiler_params=pltpu.CompilerParams(
            dimension_semantics=("parallel", "arbitrary"),
            vmem_limit_bytes=32 * 1024 * 1024),
    )(x_flat, w1, b1, w2, b2)


# ----------------------------------------------------------------------------
# Glue: BN folding, layout framing, flatten-order weight permutation, forward
# ----------------------------------------------------------------------------
def _fold_conv_bn(p, eps=1e-5):
    """Fold inference BatchNorm into the conv weight/bias (bf16 weight)."""
    scale = p["gamma"] / jnp.sqrt(p["var"] + eps)          # (Cout,)
    w = (p["w"] * scale).astype(jnp.bfloat16)              # (K, Cin, Cout)
    b = ((p["b"] - p["mean"]) * scale + p["beta"]).reshape(1, -1)
    return w, b.astype(jnp.float32)


def eeg_1d_cnn_forward(x_ncl, params, eps=1e-5):
    """x_ncl: (N, Cin, L) — same layout as the PyTorch module's input."""
    n, _, l0 = x_ncl.shape
    layouts = _layouts_for(l0)
    _, s0, d0 = layouts[0]
    l3 = l0 // 8
    s3 = s0 // 8

    # channels-last bf16, framed into the block-1 strided-halo layout (one
    # cheap XLA pad in HBM; everything downstream stays in VMEM).
    x = jnp.transpose(x_ncl, (0, 2, 1)).astype(jnp.bfloat16)      # (N, L0, Cin)
    x = jnp.pad(x, ((0, 0), (d0, s0 - d0 - l0), (0, 0)))          # (N, S0, Cin)

    conv_wb = [_fold_conv_bn(params[f"block{i}"], eps) for i in (1, 2, 3)]
    c3 = conv_wb[2][0].shape[-1]                                  # 128

    feat = fused_conv_stack(x, conv_wb, layouts)                  # (N, S3, 128)
    x_flat = feat.reshape(n, s3 * c3)                             # (l*128 + c)

    # Fold torch's channel-major flatten (c*L3 + l) AND the S3-row padded
    # layout into fc1's weight once (pad rows get zero weights).
    hidden = params["fc1_w"].shape[1]
    fc1_w = params["fc1_w"].reshape(c3, l3, hidden).transpose(1, 0, 2)
    fc1_w = jnp.pad(fc1_w, ((0, s3 - l3), (0, 0), (0, 0)))
    fc1_w = fc1_w.reshape(s3 * c3, hidden).astype(jnp.bfloat16)
    fc1_b = params["fc1_b"].reshape(1, hidden).astype(jnp.float32)
    fc2_w = params["fc2_w"].astype(jnp.bfloat16)
    fc2_b = params["fc2_b"].reshape(1, -1).astype(jnp.float32)

    return mlp(x_flat, fc1_w, fc1_b, fc2_w, fc2_b,
               block_k=_pick_fc1_block_k(s3, hidden),
               block_n=_pick_mlp_batch_tile(n))


# ----------------------------------------------------------------------------
# Pure-JAX f32 reference (torch semantics) for a correctness sanity check
# ----------------------------------------------------------------------------
def reference_forward(x_ncl, params, eps=1e-5):
    x = jnp.transpose(x_ncl, (0, 2, 1)).astype(jnp.float32)
    for i in (1, 2, 3):
        p = params[f"block{i}"]
        k_, _, cout = p["w"].shape
        pad = (k_ - 1) // 2
        n, l, _ = x.shape
        xp = jnp.pad(x, ((0, 0), (pad, pad), (0, 0)))
        acc = jnp.zeros((n, l, cout), jnp.float32)
        for k in range(k_):
            acc += jnp.einsum("nlc,co->nlo", xp[:, k:k + l, :], p["w"][k])
        y = acc + p["b"]
        scale = p["gamma"] / jnp.sqrt(p["var"] + eps)
        shift = p["beta"] - p["mean"] * scale
        y = jnp.maximum(y * scale + shift, 0.0)
        half = l // 2                               # MaxPool1d floor semantics
        x = jnp.max(y[:, :2 * half].reshape(n, half, 2, cout), axis=2)
    n = x.shape[0]
    x = jnp.transpose(x, (0, 2, 1)).reshape(n, -1)  # channel-major flatten
    h = jnp.maximum(x @ params["fc1_w"] + params["fc1_b"], 0.0)
    return h @ params["fc2_w"] + params["fc2_b"]


# ----------------------------------------------------------------------------
# Deterministic parameter construction
# ----------------------------------------------------------------------------
def make_params(key, num_channels, num_classes, seq_len):
    keys = jax.random.split(key, 32)
    ki = iter(range(32))

    def conv_params(cin, cout):
        # PyTorch Conv1d weight is (Cout, Cin, K); store as (K, Cin, Cout)
        w_torch = 0.1 * jax.random.normal(keys[next(ki)], (cout, cin, KSIZE),
                                          jnp.float32)
        w = jnp.transpose(w_torch, (2, 1, 0))
        b = 0.1 * jax.random.normal(keys[next(ki)], (cout,), jnp.float32)
        gamma = 1.0 + 0.1 * jax.random.normal(keys[next(ki)], (cout,), jnp.float32)
        beta = 0.1 * jax.random.normal(keys[next(ki)], (cout,), jnp.float32)
        mean = 0.1 * jax.random.normal(keys[next(ki)], (cout,), jnp.float32)
        var = 0.5 + jnp.abs(jax.random.normal(keys[next(ki)], (cout,), jnp.float32))
        return dict(w=w, b=b, gamma=gamma, beta=beta, mean=mean, var=var)

    params = {
        "block1": conv_params(num_channels, 32),
        "block2": conv_params(32, 64),
        "block3": conv_params(64, 128),
    }
    flat_dim = 128 * (seq_len // 8)     # mirrors 128 * (750 // 8) in the module
    params["fc1_w"] = 0.05 * jax.random.normal(keys[next(ki)], (flat_dim, 512),
                                               jnp.float32)
    params["fc1_b"] = 0.05 * jax.random.normal(keys[next(ki)], (512,), jnp.float32)
    params["fc2_w"] = 0.05 * jax.random.normal(keys[next(ki)], (512, num_classes),
                                               jnp.float32)
    params["fc2_b"] = 0.05 * jax.random.normal(keys[next(ki)], (num_classes,),
                                               jnp.float32)
    return params


if __name__ == "__main__":
    # Small shapes consistent with the module: batch=2, channels=7, classes=10.
    # seq_len=30 (-> 15 -> 7 -> 3) exercises the odd-length MaxPool path that
    # the real seq_len=750 (-> 375 -> 187 -> 93) hits.
    N, C_IN, SEQ, NUM_CLASSES = 2, 7, 30, 10

    key = jax.random.PRNGKey(0)
    k_x, k_p = jax.random.split(key)
    x = jax.random.normal(k_x, (N, C_IN, SEQ), jnp.float32)   # torch (N, C, L)
    params = make_params(k_p, C_IN, NUM_CLASSES, SEQ)

    out = jax.jit(eeg_1d_cnn_forward)(x, params)
    out = jax.block_until_ready(out)

    ref = reference_forward(x, params)
    assert out.shape == (N, NUM_CLASSES)
    # bf16 matmuls (f32 accumulation) -> looser tolerance than all-f32
    assert jnp.allclose(out, ref, rtol=5e-2, atol=5e-2), "mismatch vs reference"

    print("KERNEL_OK")
</pallas_src>

<mosaic_0001>
module attributes {stable_mosaic.version = 11 : i64} {
  func.func @kernel(%arg0: i32, %arg1: memref<1x48x7xbf16, #tpu.memory_space<vmem>>, %arg2: memref<5x7x32xbf16, #tpu.memory_space<vmem>>, %arg3: memref<1x32xf32, #tpu.memory_space<vmem>>, %arg4: memref<5x32x64xbf16, #tpu.memory_space<vmem>>, %arg5: memref<1x64xf32, #tpu.memory_space<vmem>>, %arg6: memref<5x64x128xbf16, #tpu.memory_space<vmem>>, %arg7: memref<1x128xf32, #tpu.memory_space<vmem>>, %arg8: memref<1x6x128xbf16, #tpu.memory_space<vmem>>) attributes {dimension_semantics = [#tpu.dimension_semantics<parallel>], iteration_bounds = array<i64: 2>, scalar_prefetch = 0 : i64, scratch_operands = 0 : i64, tpu.core_type = #tpu.core_type<tc>, window_params = [{transform_indices = @transform_0, window_bounds = array<i64: 1, 48, 7>}, {pipeline_mode = #tpu.pipeline_mode<synchronous>, transform_indices = @transform_1, window_bounds = array<i64: 5, 7, 32>}, {pipeline_mode = #tpu.pipeline_mode<synchronous>, transform_indices = @transform_2, window_bounds = array<i64: 1, 32>}, {pipeline_mode = #tpu.pipeline_mode<synchronous>, transform_indices = @transform_3, window_bounds = array<i64: 5, 32, 64>}, {pipeline_mode = #tpu.pipeline_mode<synchronous>, transform_indices = @transform_4, window_bounds = array<i64: 1, 64>}, {pipeline_mode = #tpu.pipeline_mode<synchronous>, transform_indices = @transform_5, window_bounds = array<i64: 5, 64, 128>}, {pipeline_mode = #tpu.pipeline_mode<synchronous>, transform_indices = @transform_6, window_bounds = array<i64: 1, 128>}, {transform_indices = @transform_7, window_bounds = array<i64: 1, 6, 128>}]} {
    %c0 = arith.constant 0 : index
    %c0_0 = arith.constant 0 : index
    %c0_1 = arith.constant 0 : index
    %0 = vector.load %arg1[%c0, %c0_0, %c0_1] : memref<1x48x7xbf16, #tpu.memory_space<vmem>>, vector<1x48x7xbf16>
    %1 = vector.shape_cast %0 : vector<1x48x7xbf16> to vector<48x7xbf16>
    %cst = arith.constant 0.000000e+00 : bf16
    %2 = vector.broadcast %cst : bf16 to vector<8x7xbf16>
    %3 = tpu.concatenate %1, %2 in 0 : vector<48x7xbf16>, vector<8x7xbf16> -> vector<56x7xbf16>
    %4 = vector.extract_strided_slice %3 {offsets = [0, 0], sizes = [48, 7], strides = [1, 1]} : vector<56x7xbf16> to vector<48x7xbf16>
    %c0_2 = arith.constant 0 : index
    %c0_3 = arith.constant 0 : index
    %c0_4 = arith.constant 0 : index
    %5 = vector.load %arg2[%c0_2, %c0_3, %c0_4] : memref<5x7x32xbf16, #tpu.memory_space<vmem>>, vector<1x7x32xbf16>
    %6 = vector.shape_cast %5 : vector<1x7x32xbf16> to vector<7x32xbf16>
    %cst_5 = arith.constant dense<0.000000e+00> : vector<48x32xf32>
    %7 = tpu.matmul %4, %6, %cst_5 {dimension_numbers = #tpu.dot_dimension_numbers<[1], [0], [0], [1], [0, 0, 1, 1], [], []>} : vector<48x7xbf16>, vector<7x32xbf16>, vector<48x32xf32> -> vector<48x32xf32>
    %8 = vector.extract_strided_slice %3 {offsets = [1, 0], sizes = [48, 7], strides = [1, 1]} : vector<56x7xbf16> to vector<48x7xbf16>
    %c1 = arith.constant 1 : index
    %c0_6 = arith.constant 0 : index
    %c0_7 = arith.constant 0 : index
    %9 = vector.load %arg2[%c1, %c0_6, %c0_7] : memref<5x7x32xbf16, #tpu.memory_space<vmem>>, vector<1x7x32xbf16>
    %10 = vector.shape_cast %9 : vector<1x7x32xbf16> to vector<7x32xbf16>
    %cst_8 = arith.constant dense<0.000000e+00> : vector<48x32xf32>
    %11 = tpu.matmul %8, %10, %cst_8 {dimension_numbers = #tpu.dot_dimension_numbers<[1], [0], [0], [1], [0, 0, 1, 1], [], []>} : vector<48x7xbf16>, vector<7x32xbf16>, vector<48x32xf32> -> vector<48x32xf32>
    %12 = arith.addf %7, %11 : vector<48x32xf32>
    %13 = vector.extract_strided_slice %3 {offsets = [2, 0], sizes = [48, 7], strides = [1, 1]} : vector<56x7xbf16> to vector<48x7xbf16>
    %c2 = arith.constant 2 : index
    %c0_9 = arith.constant 0 : index
    %c0_10 = arith.constant 0 : index
    %14 = vector.load %arg2[%c2, %c0_9, %c0_10] : memref<5x7x32xbf16, #tpu.memory_space<vmem>>, vector<1x7x32xbf16>
    %15 = vector.shape_cast %14 : vector<1x7x32xbf16> to vector<7x32xbf16>
    %cst_11 = arith.constant dense<0.000000e+00> : vector<48x32xf32>
    %16 = tpu.matmul %13, %15, %cst_11 {dimension_numbers = #tpu.dot_dimension_numbers<[1], [0], [0], [1], [0, 0, 1, 1], [], []>} : vector<48x7xbf16>, vector<7x32xbf16>, vector<48x32xf32> -> vector<48x32xf32>
    %17 = arith.addf %12, %16 : vector<48x32xf32>
    %18 = vector.extract_strided_slice %3 {offsets = [3, 0], sizes = [48, 7], strides = [1, 1]} : vector<56x7xbf16> to vector<48x7xbf16>
    %c3 = arith.constant 3 : index
    %c0_12 = arith.constant 0 : index
    %c0_13 = arith.constant 0 : index
    %19 = vector.load %arg2[%c3, %c0_12, %c0_13] : memref<5x7x32xbf16, #tpu.memory_space<vmem>>, vector<1x7x32xbf16>
    %20 = vector.shape_cast %19 : vector<1x7x32xbf16> to vector<7x32xbf16>
    %cst_14 = arith.constant dense<0.000000e+00> : vector<48x32xf32>
    %21 = tpu.matmul %18, %20, %cst_14 {dimension_numbers = #tpu.dot_dimension_numbers<[1], [0], [0], [1], [0, 0, 1, 1], [], []>} : vector<48x7xbf16>, vector<7x32xbf16>, vector<48x32xf32> -> vector<48x32xf32>
    %22 = arith.addf %17, %21 : vector<48x32xf32>
    %23 = vector.extract_strided_slice %3 {offsets = [4, 0], sizes = [48, 7], strides = [1, 1]} : vector<56x7xbf16> to vector<48x7xbf16>
    %c4 = arith.constant 4 : index
    %c0_15 = arith.constant 0 : index
    %c0_16 = arith.constant 0 : index
    %24 = vector.load %arg2[%c4, %c0_15, %c0_16] : memref<5x7x32xbf16, #tpu.memory_space<vmem>>, vector<1x7x32xbf16>
    %25 = vector.shape_cast %24 : vector<1x7x32xbf16> to vector<7x32xbf16>
    %cst_17 = arith.constant dense<0.000000e+00> : vector<48x32xf32>
    %26 = tpu.matmul %23, %25, %cst_17 {dimension_numbers = #tpu.dot_dimension_numbers<[1], [0], [0], [1], [0, 0, 1, 1], [], []>} : vector<48x7xbf16>, vector<7x32xbf16>, vector<48x32xf32> -> vector<48x32xf32>
    %27 = arith.addf %22, %26 : vector<48x32xf32>
    %28 = tpu.iota {dimensions = array<i32: 0>} : vector<48x1xi32>
    %c48_i32 = arith.constant 48 : i32
    %c0_i32 = arith.constant 0 : i32
    %29 = arith.cmpi eq, %c48_i32, %c0_i32 : i32
    %c1_i32 = arith.constant 1 : i32
    %30 = arith.select %29, %c1_i32, %c48_i32 : i32
    %31 = vector.broadcast %30 : i32 to vector<48x1xi32>
    %32 = arith.remsi %28, %31 : vector<48x1xi32>
    %c0_i32_18 = arith.constant 0 : i32
    %33 = vector.broadcast %c0_i32_18 : i32 to vector<48x1xi32>
    %34 = arith.cmpi ne, %32, %33 : vector<48x1xi32>
    %c0_i32_19 = arith.constant 0 : i32
    %35 = vector.broadcast %c0_i32_19 : i32 to vector<48x1xi32>
    %36 = arith.cmpi slt, %32, %35 : vector<48x1xi32>
    %c0_i32_20 = arith.constant 0 : i32
    %37 = arith.cmpi slt, %30, %c0_i32_20 : i32
    %38 = vector.broadcast %37 : i1 to vector<48x1xi1>
    %39 = vector.broadcast %38 : vector<48x1xi1> to vector<48x1xi1>
    %40 = arith.xori %36, %39 : vector<48x1xi1>
    %41 = arith.andi %40, %34 : vector<48x1xi1>
    %42 = vector.broadcast %30 : i32 to vector<48x1xi32>
    %43 = arith.addi %32, %42 : vector<48x1xi32>
    %44 = arith.select %41, %43, %32 : vector<48x1xi1>, vector<48x1xi32>
    %c12_i32 = arith.constant 12 : i32
    %45 = vector.broadcast %c12_i32 : i32 to vector<48x1xi32>
    %46 = arith.cmpi sge, %44, %45 : vector<48x1xi32>
    %c42_i32 = arith.constant 42 : i32
    %47 = vector.broadcast %c42_i32 : i32 to vector<48x1xi32>
    %48 = arith.cmpi slt, %44, %47 : vector<48x1xi32>
    %49 = arith.andi %46, %48 : vector<48x1xi1>
    %c0_21 = arith.constant 0 : index
    %c0_22 = arith.constant 0 : index
    %50 = vector.load %arg3[%c0_21, %c0_22] : memref<1x32xf32, #tpu.memory_space<vmem>>, vector<1x32xf32>
    %51 = vector.broadcast %50 : vector<1x32xf32> to vector<48x32xf32>
    %52 = arith.addf %27, %51 : vector<48x32xf32>
    %cst_23 = arith.constant 0.000000e+00 : f32
    %53 = vector.broadcast %cst_23 : f32 to vector<48x32xf32>
    %54 = arith.maximumf %52, %53 : vector<48x32xf32>
    %cst_24 = arith.constant 0.000000e+00 : f32
    %55 = vector.shape_cast %49 : vector<48x1xi1> to vector<48x1xi1>
    %56 = vector.broadcast %55 : vector<48x1xi1> to vector<48x32xi1>
    %57 = vector.broadcast %cst_24 : f32 to vector<48x32xf32>
    %58 = arith.select %56, %54, %57 : vector<48x32xi1>, vector<48x32xf32>
    %59 = vector.shape_cast %58 : vector<48x32xf32> to vector<24x2x32xf32>
    %cst_25 = arith.constant dense<0xFF800000> : vector<24x32xf32>
    %60 = vector.multi_reduction <maximumf>, %59, %cst_25 [1] : vector<24x2x32xf32> to vector<24x32xf32>
    %61 = arith.truncf %60 : vector<24x32xf32> to vector<24x32xbf16>
    %cst_26 = arith.constant 0.000000e+00 : bf16
    %62 = vector.broadcast %cst_26 : bf16 to vector<8x32xbf16>
    %63 = tpu.concatenate %61, %62 in 0 : vector<24x32xbf16>, vector<8x32xbf16> -> vector<32x32xbf16>
    %64 = vector.extract_strided_slice %63 {offsets = [0, 0], sizes = [24, 32], strides = [1, 1]} : vector<32x32xbf16> to vector<24x32xbf16>
    %c0_27 = arith.constant 0 : index
    %c0_28 = arith.constant 0 : index
    %c0_29 = arith.constant 0 : index
    %65 = vector.load %arg4[%c0_27, %c0_28, %c0_29] : memref<5x32x64xbf16, #tpu.memory_space<vmem>>, vector<1x32x64xbf16>
    %66 = vector.shape_cast %65 : vector<1x32x64xbf16> to vector<32x64xbf16>
    %cst_30 = arith.constant dense<0.000000e+00> : vector<24x64xf32>
    %67 = tpu.matmul %64, %66, %cst_30 {dimension_numbers = #tpu.dot_dimension_numbers<[1], [0], [0], [1], [0, 0, 1, 1], [], []>} : vector<24x32xbf16>, vector<32x64xbf16>, vector<24x64xf32> -> vector<24x64xf32>
    %68 = vector.extract_strided_slice %63 {offsets = [1, 0], sizes = [24, 32], strides = [1, 1]} : vector<32x32xbf16> to vector<24x32xbf16>
    %c1_31 = arith.constant 1 : index
    %c0_32 = arith.constant 0 : index
    %c0_33 = arith.constant 0 : index
    %69 = vector.load %arg4[%c1_31, %c0_32, %c0_33] : memref<5x32x64xbf16, #tpu.memory_space<vmem>>, vector<1x32x64xbf16>
    %70 = vector.shape_cast %69 : vector<1x32x64xbf16> to vector<32x64xbf16>
    %cst_34 = arith.constant dense<0.000000e+00> : vector<24x64xf32>
    %71 = tpu.matmul %68, %70, %cst_34 {dimension_numbers = #tpu.dot_dimension_numbers<[1], [0], [0], [1], [0, 0, 1, 1], [], []>} : vector<24x32xbf16>, vector<32x64xbf16>, vector<24x64xf32> -> vector<24x64xf32>
    %72 = arith.addf %67, %71 : vector<24x64xf32>
    %73 = vector.extract_strided_slice %63 {offsets = [2, 0], sizes = [24, 32], strides = [1, 1]} : vector<32x32xbf16> to vector<24x32xbf16>
    %c2_35 = arith.constant 2 : index
    %c0_36 = arith.constant 0 : index
    %c0_37 = arith.constant 0 : index
    %74 = vector.load %arg4[%c2_35, %c0_36, %c0_37] : memref<5x32x64xbf16, #tpu.memory_space<vmem>>, vector<1x32x64xbf16>
    %75 = vector.shape_cast %74 : vector<1x32x64xbf16> to vector<32x64xbf16>
    %cst_38 = arith.constant dense<0.000000e+00> : vector<24x64xf32>
    %76 = tpu.matmul %73, %75, %cst_38 {dimension_numbers = #tpu.dot_dimension_numbers<[1], [0], [0], [1], [0, 0, 1, 1], [], []>} : vector<24x32xbf16>, vector<32x64xbf16>, vector<24x64xf32> -> vector<24x64xf32>
    %77 = arith.addf %72, %76 : vector<24x64xf32>
    %78 = vector.extract_strided_slice %63 {offsets = [3, 0], sizes = [24, 32], strides = [1, 1]} : vector<32x32xbf16> to vector<24x32xbf16>
    %c3_39 = arith.constant 3 : index
    %c0_40 = arith.constant 0 : index
    %c0_41 = arith.constant 0 : index
    %79 = vector.load %arg4[%c3_39, %c0_40, %c0_41] : memref<5x32x64xbf16, #tpu.memory_space<vmem>>, vector<1x32x64xbf16>
    %80 = vector.shape_cast %79 : vector<1x32x64xbf16> to vector<32x64xbf16>
    %cst_42 = arith.constant dense<0.000000e+00> : vector<24x64xf32>
    %81 = tpu.matmul %78, %80, %cst_42 {dimension_numbers = #tpu.dot_dimension_numbers<[1], [0], [0], [1], [0, 0, 1, 1], [], []>} : vector<24x32xbf16>, vector<32x64xbf16>, vector<24x64xf32> -> vector<24x64xf32>
    %82 = arith.addf %77, %81 : vector<24x64xf32>
    %83 = vector.extract_strided_slice %63 {offsets = [4, 0], sizes = [24, 32], strides = [1, 1]} : vector<32x32xbf16> to vector<24x32xbf16>
    %c4_43 = arith.constant 4 : index
    %c0_44 = arith.constant 0 : index
    %c0_45 = arith.constant 0 : index
    %84 = vector.load %arg4[%c4_43, %c0_44, %c0_45] : memref<5x32x64xbf16, #tpu.memory_space<vmem>>, vector<1x32x64xbf16>
    %85 = vector.shape_cast %84 : vector<1x32x64xbf16> to vector<32x64xbf16>
    %cst_46 = arith.constant dense<0.000000e+00> : vector<24x64xf32>
    %86 = tpu.matmul %83, %85, %cst_46 {dimension_numbers = #tpu.dot_dimension_numbers<[1], [0], [0], [1], [0, 0, 1, 1], [], []>} : vector<24x32xbf16>, vector<32x64xbf16>, vector<24x64xf32> -> vector<24x64xf32>
    %87 = arith.addf %82, %86 : vector<24x64xf32>
    %88 = tpu.iota {dimensions = array<i32: 0>} : vector<24x1xi32>
    %c24_i32 = arith.constant 24 : i32
    %c0_i32_47 = arith.constant 0 : i32
    %89 = arith.cmpi eq, %c24_i32, %c0_i32_47 : i32
    %c1_i32_48 = arith.constant 1 : i32
    %90 = arith.select %89, %c1_i32_48, %c24_i32 : i32
    %91 = vector.broadcast %90 : i32 to vector<24x1xi32>
    %92 = arith.remsi %88, %91 : vector<24x1xi32>
    %c0_i32_49 = arith.constant 0 : i32
    %93 = vector.broadcast %c0_i32_49 : i32 to vector<24x1xi32>
    %94 = arith.cmpi ne, %92, %93 : vector<24x1xi32>
    %c0_i32_50 = arith.constant 0 : i32
    %95 = vector.broadcast %c0_i32_50 : i32 to vector<24x1xi32>
    %96 = arith.cmpi slt, %92, %95 : vector<24x1xi32>
    %c0_i32_51 = arith.constant 0 : i32
    %97 = arith.cmpi slt, %90, %c0_i32_51 : i32
    %98 = vector.broadcast %97 : i1 to vector<24x1xi1>
    %99 = vector.broadcast %98 : vector<24x1xi1> to vector<24x1xi1>
    %100 = arith.xori %96, %99 : vector<24x1xi1>
    %101 = arith.andi %100, %94 : vector<24x1xi1>
    %102 = vector.broadcast %90 : i32 to vector<24x1xi32>
    %103 = arith.addi %92, %102 : vector<24x1xi32>
    %104 = arith.select %101, %103, %92 : vector<24x1xi1>, vector<24x1xi32>
    %c4_i32 = arith.constant 4 : i32
    %105 = vector.broadcast %c4_i32 : i32 to vector<24x1xi32>
    %106 = arith.cmpi sge, %104, %105 : vector<24x1xi32>
    %c18_i32 = arith.constant 18 : i32
    %107 = vector.broadcast %c18_i32 : i32 to vector<24x1xi32>
    %108 = arith.cmpi slt, %104, %107 : vector<24x1xi32>
    %109 = arith.andi %106, %108 : vector<24x1xi1>
    %c0_52 = arith.constant 0 : index
    %c0_53 = arith.constant 0 : index
    %110 = vector.load %arg5[%c0_52, %c0_53] : memref<1x64xf32, #tpu.memory_space<vmem>>, vector<1x64xf32>
    %111 = vector.broadcast %110 : vector<1x64xf32> to vector<24x64xf32>
    %112 = arith.addf %87, %111 : vector<24x64xf32>
    %cst_54 = arith.constant 0.000000e+00 : f32
    %113 = vector.broadcast %cst_54 : f32 to vector<24x64xf32>
    %114 = arith.maximumf %112, %113 : vector<24x64xf32>
    %cst_55 = arith.constant 0.000000e+00 : f32
    %115 = vector.shape_cast %109 : vector<24x1xi1> to vector<24x1xi1>
    %116 = vector.broadcast %115 : vector<24x1xi1> to vector<24x64xi1>
    %117 = vector.broadcast %cst_55 : f32 to vector<24x64xf32>
    %118 = arith.select %116, %114, %117 : vector<24x64xi1>, vector<24x64xf32>
    %119 = vector.shape_cast %118 : vector<24x64xf32> to vector<12x2x64xf32>
    %cst_56 = arith.constant dense<0xFF800000> : vector<12x64xf32>
    %120 = vector.multi_reduction <maximumf>, %119, %cst_56 [1] : vector<12x2x64xf32> to vector<12x64xf32>
    %121 = arith.truncf %120 : vector<12x64xf32> to vector<12x64xbf16>
    %cst_57 = arith.constant 0.000000e+00 : bf16
    %122 = vector.broadcast %cst_57 : bf16 to vector<8x64xbf16>
    %123 = tpu.concatenate %121, %122 in 0 : vector<12x64xbf16>, vector<8x64xbf16> -> vector<20x64xbf16>
    %124 = vector.extract_strided_slice %123 {offsets = [0, 0], sizes = [12, 64], strides = [1, 1]} : vector<20x64xbf16> to vector<12x64xbf16>
    %c0_58 = arith.constant 0 : index
    %c0_59 = arith.constant 0 : index
    %c0_60 = arith.constant 0 : index
    %125 = vector.load %arg6[%c0_58, %c0_59, %c0_60] : memref<5x64x128xbf16, #tpu.memory_space<vmem>>, vector<1x64x128xbf16>
    %126 = vector.shape_cast %125 : vector<1x64x128xbf16> to vector<64x128xbf16>
    %cst_61 = arith.constant dense<0.000000e+00> : vector<12x128xf32>
    %127 = tpu.matmul %124, %126, %cst_61 {dimension_numbers = #tpu.dot_dimension_numbers<[1], [0], [0], [1], [0, 0, 1, 1], [], []>} : vector<12x64xbf16>, vector<64x128xbf16>, vector<12x128xf32> -> vector<12x128xf32>
    %128 = vector.extract_strided_slice %123 {offsets = [1, 0], sizes = [12, 64], strides = [1, 1]} : vector<20x64xbf16> to vector<12x64xbf16>
    %c1_62 = arith.constant 1 : index
    %c0_63 = arith.constant 0 : index
    %c0_64 = arith.constant 0 : index
    %129 = vector.load %arg6[%c1_62, %c0_63, %c0_64] : memref<5x64x128xbf16, #tpu.memory_space<vmem>>, vector<1x64x128xbf16>
    %130 = vector.shape_cast %129 : vector<1x64x128xbf16> to vector<64x128xbf16>
    %cst_65 = arith.constant dense<0.000000e+00> : vector<12x128xf32>
    %131 = tpu.matmul %128, %130, %cst_65 {dimension_numbers = #tpu.dot_dimension_numbers<[1], [0], [0], [1], [0, 0, 1, 1], [], []>} : vector<12x64xbf16>, vector<64x128xbf16>, vector<12x128xf32> -> vector<12x128xf32>
    %132 = arith.addf %127, %131 : vector<12x128xf32>
    %133 = vector.extract_strided_slice %123 {offsets = [2, 0], sizes = [12, 64], strides = [1, 1]} : vector<20x64xbf16> to vector<12x64xbf16>
    %c2_66 = arith.constant 2 : index
    %c0_67 = arith.constant 0 : index
    %c0_68 = arith.constant 0 : index
    %134 = vector.load %arg6[%c2_66, %c0_67, %c0_68] : memref<5x64x128xbf16, #tpu.memory_space<vmem>>, vector<1x64x128xbf16>
    %135 = vector.shape_cast %134 : vector<1x64x128xbf16> to vector<64x128xbf16>
    %cst_69 = arith.constant dense<0.000000e+00> : vector<12x128xf32>
    %136 = tpu.matmul %133, %135, %cst_69 {dimension_numbers = #tpu.dot_dimension_numbers<[1], [0], [0], [1], [0, 0, 1, 1], [], []>} : vector<12x64xbf16>, vector<64x128xbf16>, vector<12x128xf32> -> vector<12x128xf32>
    %137 = arith.addf %132, %136 : vector<12x128xf32>
    %138 = vector.extract_strided_slice %123 {offsets = [3, 0], sizes = [12, 64], strides = [1, 1]} : vector<20x64xbf16> to vector<12x64xbf16>
    %c3_70 = arith.constant 3 : index
    %c0_71 = arith.constant 0 : index
    %c0_72 = arith.constant 0 : index
    %139 = vector.load %arg6[%c3_70, %c0_71, %c0_72] : memref<5x64x128xbf16, #tpu.memory_space<vmem>>, vector<1x64x128xbf16>
    %140 = vector.shape_cast %139 : vector<1x64x128xbf16> to vector<64x128xbf16>
    %cst_73 = arith.constant dense<0.000000e+00> : vector<12x128xf32>
    %141 = tpu.matmul %138, %140, %cst_73 {dimension_numbers = #tpu.dot_dimension_numbers<[1], [0], [0], [1], [0, 0, 1, 1], [], []>} : vector<12x64xbf16>, vector<64x128xbf16>, vector<12x128xf32> -> vector<12x128xf32>
    %142 = arith.addf %137, %141 : vector<12x128xf32>
    %143 = vector.extract_strided_slice %123 {offsets = [4, 0], sizes = [12, 64], strides = [1, 1]} : vector<20x64xbf16> to vector<12x64xbf16>
    %c4_74 = arith.constant 4 : index
    %c0_75 = arith.constant 0 : index
    %c0_76 = arith.constant 0 : index
    %144 = vector.load %arg6[%c4_74, %c0_75, %c0_76] : memref<5x64x128xbf16, #tpu.memory_space<vmem>>, vector<1x64x128xbf16>
    %145 = vector.shape_cast %144 : vector<1x64x128xbf16> to vector<64x128xbf16>
    %cst_77 = arith.constant dense<0.000000e+00> : vector<12x128xf32>
    %146 = tpu.matmul %143, %145, %cst_77 {dimension_numbers = #tpu.dot_dimension_numbers<[1], [0], [0], [1], [0, 0, 1, 1], [], []>} : vector<12x64xbf16>, vector<64x128xbf16>, vector<12x128xf32> -> vector<12x128xf32>
    %147 = arith.addf %142, %146 : vector<12x128xf32>
    %148 = tpu.iota {dimensions = array<i32: 0>} : vector<12x1xi32>
    %c12_i32_78 = arith.constant 12 : i32
    %c0_i32_79 = arith.constant 0 : i32
    %149 = arith.cmpi eq, %c12_i32_78, %c0_i32_79 : i32
    %c1_i32_80 = arith.constant 1 : i32
    %150 = arith.select %149, %c1_i32_80, %c12_i32_78 : i32
    %151 = vector.broadcast %150 : i32 to vector<12x1xi32>
    %152 = arith.remsi %148, %151 : vector<12x1xi32>
    %c0_i32_81 = arith.constant 0 : i32
    %153 = vector.broadcast %c0_i32_81 : i32 to vector<12x1xi32>
    %154 = arith.cmpi ne, %152, %153 : vector<12x1xi32>
    %c0_i32_82 = arith.constant 0 : i32
    %155 = vector.broadcast %c0_i32_82 : i32 to vector<12x1xi32>
    %156 = arith.cmpi slt, %152, %155 : vector<12x1xi32>
    %c0_i32_83 = arith.constant 0 : i32
    %157 = arith.cmpi slt, %150, %c0_i32_83 : i32
    %158 = vector.broadcast %157 : i1 to vector<12x1xi1>
    %159 = vector.broadcast %158 : vector<12x1xi1> to vector<12x1xi1>
    %160 = arith.xori %156, %159 : vector<12x1xi1>
    %161 = arith.andi %160, %154 : vector<12x1xi1>
    %162 = vector.broadcast %150 : i32 to vector<12x1xi32>
    %163 = arith.addi %152, %162 : vector<12x1xi32>
    %164 = arith.select %161, %163, %152 : vector<12x1xi1>, vector<12x1xi32>
    %c0_i32_84 = arith.constant 0 : i32
    %165 = vector.broadcast %c0_i32_84 : i32 to vector<12x1xi32>
    %166 = arith.cmpi sge, %164, %165 : vector<12x1xi32>
    %c6_i32 = arith.constant 6 : i32
    %167 = vector.broadcast %c6_i32 : i32 to vector<12x1xi32>
    %168 = arith.cmpi slt, %164, %167 : vector<12x1xi32>
    %169 = arith.andi %166, %168 : vector<12x1xi1>
    %c0_85 = arith.constant 0 : index
    %c0_86 = arith.constant 0 : index
    %170 = vector.load %arg7[%c0_85, %c0_86] : memref<1x128xf32, #tpu.memory_space<vmem>>, vector<1x128xf32>
    %171 = vector.broadcast %170 : vector<1x128xf32> to vector<12x128xf32>
    %172 = arith.addf %147, %171 : vector<12x128xf32>
    %cst_87 = arith.constant 0.000000e+00 : f32
    %173 = vector.broadcast %cst_87 : f32 to vector<12x128xf32>
    %174 = arith.maximumf %172, %173 : vector<12x128xf32>
    %cst_88 = arith.constant 0.000000e+00 : f32
    %175 = vector.shape_cast %169 : vector<12x1xi1> to vector<12x1xi1>
    %176 = vector.broadcast %175 : vector<12x1xi1> to vector<12x128xi1>
    %177 = vector.broadcast %cst_88 : f32 to vector<12x128xf32>
    %178 = arith.select %176, %174, %177 : vector<12x128xi1>, vector<12x128xf32>
    %179 = vector.shape_cast %178 : vector<12x128xf32> to vector<6x2x128xf32>
    %cst_89 = arith.constant dense<0xFF800000> : vector<6x128xf32>
    %180 = vector.multi_reduction <maximumf>, %179, %cst_89 [1] : vector<6x2x128xf32> to vector<6x128xf32>
    %181 = arith.truncf %180 : vector<6x128xf32> to vector<6x128xbf16>
    %182 = vector.shape_cast %181 : vector<6x128xbf16> to vector<1x6x128xbf16>
    %c0_90 = arith.constant 0 : index
    %c0_91 = arith.constant 0 : index
    %c0_92 = arith.constant 0 : index
    %183 = vector.load %arg8[%c0_90, %c0_91, %c0_92] : memref<1x6x128xbf16, #tpu.memory_space<vmem>>, vector<1x6x128xbf16>
    tpu.vector_store %arg8[%c0_90, %c0_91, %c0_92], %182 {strides = array<i32>} : memref<1x6x128xbf16, #tpu.memory_space<vmem>>, vector<1x6x128xbf16>,
    return
  }
  func.func @transform_0(%arg0: i32) -> (i32, i32, i32) {
    %c0_i32 = arith.constant 0 : i32
    %c0_i32_0 = arith.constant 0 : i32
    %c0_i32_1 = arith.constant 0 : i32
    return %arg0, %c0_i32, %c0_i32_0 : i32, i32, i32
  }
  func.func @transform_1(%arg0: i32) -> (i32, i32, i32) {
    %c0_i32 = arith.constant 0 : i32
    %c0_i32_0 = arith.constant 0 : i32
    %c0_i32_1 = arith.constant 0 : i32
    %c0_i32_2 = arith.constant 0 : i32
    return %c0_i32, %c0_i32_0, %c0_i32_1 : i32, i32, i32
  }
  func.func @transform_2(%arg0: i32) -> (i32, i32) {
    %c0_i32 = arith.constant 0 : i32
    %c0_i32_0 = arith.constant 0 : i32
    %c0_i32_1 = arith.constant 0 : i32
    return %c0_i32, %c0_i32_0 : i32, i32
  }
  func.func @transform_3(%arg0: i32) -> (i32, i32, i32) {
    %c0_i32 = arith.constant 0 : i32
    %c0_i32_0 = arith.constant 0 : i32
    %c0_i32_1 = arith.constant 0 : i32
    %c0_i32_2 = arith.constant 0 : i32
    return %c0_i32, %c0_i32_0, %c0_i32_1 : i32, i32, i32
  }
  func.func @transform_4(%arg0: i32) -> (i32, i32) {
    %c0_i32 = arith.constant 0 : i32
    %c0_i32_0 = arith.constant 0 : i32
    %c0_i32_1 = arith.constant 0 : i32
    return %c0_i32, %c0_i32_0 : i32, i32
  }
  func.func @transform_5(%arg0: i32) -> (i32, i32, i32) {
    %c0_i32 = arith.constant 0 : i32
    %c0_i32_0 = arith.constant 0 : i32
    %c0_i32_1 = arith.constant 0 : i32
    %c0_i32_2 = arith.constant 0 : i32
    return %c0_i32, %c0_i32_0, %c0_i32_1 : i32, i32, i32
  }
  func.func @transform_6(%arg0: i32) -> (i32, i32) {
    %c0_i32 = arith.constant 0 : i32
    %c0_i32_0 = arith.constant 0 : i32
    %c0_i32_1 = arith.constant 0 : i32
    return %c0_i32, %c0_i32_0 : i32, i32
  }
  func.func @transform_7(%arg0: i32) -> (i32, i32, i32) {
    %c0_i32 = arith.constant 0 : i32
    %c0_i32_0 = arith.constant 0 : i32
    %c0_i32_1 = arith.constant 0 : i32
    return %arg0, %c0_i32, %c0_i32_0 : i32, i32, i32
  }
}

module attributes {stable_mosaic.version = 11 : i64} {
  func.func @_mlp_kernel(%arg0: i32, %arg1: i32, %arg2: memref<2x384xbf16, #tpu.memory_space<vmem>>, %arg3: memref<384x512xbf16, #tpu.memory_space<vmem>>, %arg4: memref<1x512xf32, #tpu.memory_space<vmem>>, %arg5: memref<512x10xbf16, #tpu.memory_space<vmem>>, %arg6: memref<1x10xf32, #tpu.memory_space<vmem>>, %arg7: memref<2x10xf32, #tpu.memory_space<vmem>>, %arg8: memref<2x512xf32, #tpu.memory_space<vmem>>) attributes {dimension_semantics = [#tpu.dimension_semantics<parallel>, #tpu.dimension_semantics<arbitrary>], iteration_bounds = array<i64: 1, 2>, scalar_prefetch = 0 : i64, scratch_operands = 1 : i64, tpu.core_type = #tpu.core_type<tc>, window_params = [{transform_indices = @transform_0, window_bounds = array<i64: 2, 384>}, {transform_indices = @transform_1, window_bounds = array<i64: 384, 512>}, {pipeline_mode = #tpu.pipeline_mode<synchronous>, transform_indices = @transform_2, window_bounds = array<i64: 1, 512>}, {pipeline_mode = #tpu.pipeline_mode<synchronous>, transform_indices = @transform_3, window_bounds = array<i64: 512, 10>}, {pipeline_mode = #tpu.pipeline_mode<synchronous>, transform_indices = @transform_4, window_bounds = array<i64: 1, 10>}, {transform_indices = @transform_5, window_bounds = array<i64: 2, 10>}]} {
    %c0_i32 = arith.constant 0 : i32
    %0 = arith.cmpi eq, %arg1, %c0_i32 : i32
    %1 = arith.extui %0 : i1 to i32
    %c0_i32_0 = arith.constant 0 : i32
    %2 = arith.cmpi ne, %1, %c0_i32_0 : i32
    scf.if %2 {
      %cst_9 = arith.constant 0.000000e+00 : f32
      %12 = vector.broadcast %cst_9 : f32 to vector<2x512xf32>
      %c0_10 = arith.constant 0 : index
      %c0_11 = arith.constant 0 : index
      %13 = vector.load %arg8[%c0_10, %c0_11] : memref<2x512xf32, #tpu.memory_space<vmem>>, vector<2x512xf32>
      tpu.vector_store %arg8[%c0_10, %c0_11], %12 {strides = array<i32>} : memref<2x512xf32, #tpu.memory_space<vmem>>, vector<2x512xf32>,
    } else {
    }
    %c0 = arith.constant 0 : index
    %c0_1 = arith.constant 0 : index
    %3 = vector.load %arg8[%c0, %c0_1] : memref<2x512xf32, #tpu.memory_space<vmem>>, vector<2x512xf32>
    %c0_2 = arith.constant 0 : index
    %c0_3 = arith.constant 0 : index
    %4 = vector.load %arg2[%c0_2, %c0_3] : memref<2x384xbf16, #tpu.memory_space<vmem>>, vector<2x384xbf16>
    %c0_4 = arith.constant 0 : index
    %c0_5 = arith.constant 0 : index
    %5 = vector.load %arg3[%c0_4, %c0_5] : memref<384x512xbf16, #tpu.memory_space<vmem>>, vector<384x512xbf16>
    %cst = arith.constant dense<0.000000e+00> : vector<2x512xf32>
    %6 = tpu.matmul %4, %5, %cst {dimension_numbers = #tpu.dot_dimension_numbers<[1], [0], [0], [1], [0, 0, 1, 1], [], []>} : vector<2x384xbf16>, vector<384x512xbf16>, vector<2x512xf32> -> vector<2x512xf32>
    %7 = arith.addf %3, %6 : vector<2x512xf32>
    %c0_6 = arith.constant 0 : index
    %c0_7 = arith.constant 0 : index
    %8 = vector.load %arg8[%c0_6, %c0_7] : memref<2x512xf32, #tpu.memory_space<vmem>>, vector<2x512xf32>
    tpu.vector_store %arg8[%c0_6, %c0_7], %7 {strides = array<i32>} : memref<2x512xf32, #tpu.memory_space<vmem>>, vector<2x512xf32>,
    %c1_i32 = arith.constant 1 : i32
    %9 = arith.cmpi eq, %arg1, %c1_i32 : i32
    %10 = arith.extui %9 : i1 to i32
    %c0_i32_8 = arith.constant 0 : i32
    %11 = arith.cmpi ne, %10, %c0_i32_8 : i32
    scf.if %11 {
      %c0_9 = arith.constant 0 : index
      %c0_10 = arith.constant 0 : index
      %12 = vector.load %arg8[%c0_9, %c0_10] : memref<2x512xf32, #tpu.memory_space<vmem>>, vector<2x512xf32>
      %c0_11 = arith.constant 0 : index
      %c0_12 = arith.constant 0 : index
      %13 = vector.load %arg4[%c0_11, %c0_12] : memref<1x512xf32, #tpu.memory_space<vmem>>, vector<1x512xf32>
      %14 = vector.broadcast %13 : vector<1x512xf32> to vector<2x512xf32>
      %15 = arith.addf %12, %14 : vector<2x512xf32>
      %cst_13 = arith.constant 0.000000e+00 : f32
      %16 = vector.broadcast %cst_13 : f32 to vector<2x512xf32>
      %17 = arith.maximumf %15, %16 : vector<2x512xf32>
      %18 = arith.truncf %17 : vector<2x512xf32> to vector<2x512xbf16>
      %c0_14 = arith.constant 0 : index
      %c0_15 = arith.constant 0 : index
      %19 = vector.load %arg5[%c0_14, %c0_15] : memref<512x10xbf16, #tpu.memory_space<vmem>>, vector<512x10xbf16>
      %cst_16 = arith.constant dense<0.000000e+00> : vector<2x10xf32>
      %20 = tpu.matmul %18, %19, %cst_16 {dimension_numbers = #tpu.dot_dimension_numbers<[1], [0], [0], [1], [0, 0, 1, 1], [], []>} : vector<2x512xbf16>, vector<512x10xbf16>, vector<2x10xf32> -> vector<2x10xf32>
      %c0_17 = arith.constant 0 : index
      %c0_18 = arith.constant 0 : index
      %21 = vector.load %arg6[%c0_17, %c0_18] : memref<1x10xf32, #tpu.memory_space<vmem>>, vector<1x10xf32>
      %22 = vector.broadcast %21 : vector<1x10xf32> to vector<2x10xf32>
      %23 = arith.addf %20, %22 : vector<2x10xf32>
      %c0_19 = arith.constant 0 : index
      %c0_20 = arith.constant 0 : index
      %24 = vector.load %arg7[%c0_19, %c0_20] : memref<2x10xf32, #tpu.memory_space<vmem>>, vector<2x10xf32>
      tpu.vector_store %arg7[%c0_19, %c0_20], %23 {strides = array<i32>} : memref<2x10xf32, #tpu.memory_space<vmem>>, vector<2x10xf32>,
    } else {
    }
    return
  }
  func.func @transform_0(%arg0: i32, %arg1: i32) -> (i32, i32) {
    %c0_i32 = arith.constant 0 : i32
    return %arg0, %arg1 : i32, i32
  }
  func.func @transform_1(%arg0: i32, %arg1: i32) -> (i32, i32) {
    %c0_i32 = arith.constant 0 : i32
    %c0_i32_0 = arith.constant 0 : i32
    return %arg1, %c0_i32 : i32, i32
  }
  func.func @transform_2(%arg0: i32, %arg1: i32) -> (i32, i32) {
    %c0_i32 = arith.constant 0 : i32
    %c0_i32_0 = arith.constant 0 : i32
    %c0_i32_1 = arith.constant 0 : i32
    return %c0_i32, %c0_i32_0 : i32, i32
  }
  func.func @transform_3(%arg0: i32, %arg1: i32) -> (i32, i32) {
    %c0_i32 = arith.constant 0 : i32
    %c0_i32_0 = arith.constant 0 : i32
    %c0_i32_1 = arith.constant 0 : i32
    return %c0_i32, %c0_i32_0 : i32, i32
  }
  func.func @transform_4(%arg0: i32, %arg1: i32) -> (i32, i32) {
    %c0_i32 = arith.constant 0 : i32
    %c0_i32_0 = arith.constant 0 : i32
    %c0_i32_1 = arith.constant 0 : i32
    return %c0_i32, %c0_i32_0 : i32, i32
  }
  func.func @transform_5(%arg0: i32, %arg1: i32) -> (i32, i32) {
    %c0_i32 = arith.constant 0 : i32
    %c0_i32_0 = arith.constant 0 : i32
    return %arg0, %c0_i32 : i32, i32
  }
}

</mosaic_0001>

<bundles_post_ra>
// kernel: eeg_1d_cnn_forward.2
= control target key start
LH: loop header
LB: loop body
LE: loop exit
PB: predicated region body
PF: predicated region fallthrough
CT: control target
= control target key end

     0   :  { %s3082_s24 = smov 0   ;;  %s3656_s0 = inlined_call_operand.vmem [shape: bf16[2,48,7], index: 0, kind: input, shape index: {}]   ;;  %s3657_s1 = inlined_call_operand.vmem [shape: bf16[5,7,32], index: 1, kind: input, shape index: {}]   ;;  %s3658_s2 = inlined_call_operand.vmem [shape: f32[1,32], index: 2, kind: input, shape index: {}]   ;;  %s3659_s3 = inlined_call_operand.vmem [shape: bf16[5,32,64], index: 3, kind: input, shape index: {}]   ;;  %s3660_s4 = inlined_call_operand.vmem [shape: f32[1,64], index: 4, kind: input, shape index: {}]   ;;  %s3661_s5 = inlined_call_operand.vmem [shape: bf16[5,64,128], index: 5, kind: input, shape index: {}]   ;;  %s3662_s6 = inlined_call_operand.vmem [shape: f32[1,128], index: 6, kind: input, shape index: {}]   ;;  %s3663_s7 = inlined_call_operand.vmem [shape: bf16[2,6,128], index: 7, kind: output, shape index: {}]  }
   0x1 LB: > { %s2594_s25 = sadd.s32 4294967295, %s3035_s24   ;;  %p2598_p0 = scmp.ge.s32.totalorder %s3035_s24, 1  ;;  %s3035_s24 = sphi %s3082_s24, %s17_s24  }
   0x2   : > { %p237_p1 = scmp.lt.s32.totalorder %s3035_s24, 3 }
   0x4   : > { %p238_p2 = pnand %p2598_p0, %p237_p1 }
   0x5   : > { %v2604_v0 = vld [vmem:[%s3657_s1 + $0x4] sm:$0xf] (!%p238_p2)  ;;  %vm341_vm0 = vcmask (!%p238_p2), 1042432   ;;  %vm3670_vm1 = vcmask (!%p238_p2), 1043456   ;;  %v3037_v1 = vmov (!%p238_p2), 0.0   ;;  %v3038_v2 = vmov (!%p238_p2), 65535  }
   0x6   : > { %241 = sbr.rel (%p238_p2) target bundleno = 944 (0x3b0), region = 48  ;;  %2798 = vmatprep.subr.bf16.mxu0 (!%p238_p2), %v3037_v1  ;;  %2968 = vmatprep.subr.bf16.mxu1 (!%p238_p2), %v3037_v1  ;;  %v343_v3 = vsel (!%p238_p2), %vm341_vm0, 4294967295, %v3038_v2  ;;  %p268_p3 = scmp.lt.s32.totalorder (!%p238_p2), %s2594_s25, 1  ;;  %vm3664_vm2 = vmmov (!%p238_p2), 0   ;;  %v2611_v14 = vld [vmem:[%s3657_s1 + $0x8] sm:$0xf] (!%p238_p2)  ;;  %v737_v60 = vlaneseq (!%p238_p2) }
   0x7   : > { %v344_v4 = vsel (!%p238_p2), %vm3670_vm1, %v343_v3, 0  ;;  %2800 = vmatprep.mubr.msk.bf16.mxu0 (!%p238_p2), %vm3664_vm2, %v3037_v1  ;;  %2808 = vmatprep.mubr.msk.bf16.mxu1 (!%p238_p2), %vm3664_vm2, %v3037_v1  ;;  %v299_v17 = vld [vmem:[%s3657_s1] sm:$0xf] (!%p238_p2)  ;;  %vm3667_vm3 = vsmask.f32 (!%p238_p2), 7424  ;;  %v3040_v19 = vmov (!%p238_p2), 0  }
   0x8   : > { %v346_v5 = vand.u32 (!%p238_p2), %v2604_v0, %v344_v4  ;;  %v3126_v20 = vrot.slane (!%p238_p2), %v3040_v19, 1  ;;  %vm331_vm4 = vcmask (!%p238_p2), 56320   ;;  %v492_v22 = vand.u32 (!%p238_p2), %v2611_v14, %v344_v4  ;;  %v2615_v29 = vld [vmem:[%s3657_s1 + $0xc] sm:$0xf] (!%p238_p2)  ;;  %v2619_v34 = vld [vmem:[%s3657_s1 + $0x10] sm:$0xf] (!%p238_p2) }
   0x9   : > { %v412_v25 = vand.u32 (!%p238_p2), %v344_v4, %v299_v17  ;;  %vm3669_vm5 = vcmask (!%p238_p2), 1046528   ;;  %v587_v33 = vand.u32 (!%p238_p2), %v2615_v29, %v344_v4  ;;  %v672_v36 = vand.u32 (!%p238_p2), %v2619_v34, %v344_v4  ;;  %v2999_v61 = vld [vmem:[%s3659_s3 + $0x10] sm:$0xff] (!%p238_p2)   ;;  %v3000_v62 = vld [vmem:[%s3659_s3 + $0x18] sm:$0xff] (!%p238_p2)  }
   0xa   : > { %2799 = vmatpush3.bf16.msra.mxu0 (!%p238_p2), %v346_v5  ;;  %2969 = vmatpush3.bf16.msra.mxu1 (!%p238_p2), %v346_v5  ;;  %vm3666_vm6 = vsmask.f32 (!%p238_p2), 6400  ;;  %vm3668_vm7 = vcmask (!%p238_p2), 1045504   ;;  %v574_v54 = vrot.slane (!%p238_p2), %v3040_v19, 2  ;;  %v3001_v63 = vld [vmem:[%s3659_s3 + $0x30] sm:$0xff] (!%p238_p2)   ;;  %v3002_v0 = vld [vmem:[%s3659_s3 + $0x38] sm:$0xff] (!%p238_p2)  }
   0xb   : > { %2826 = vmatprep.subr.bf16.mxu0 (!%p238_p2), %v3037_v1  ;;  %2812 = vmatprep.subr.bf16.mxu1 (!%p238_p2), %v3037_v1 }
   0xc   : > { %v575_v56 = vor.u32 (!%p238_p2), %v574_v54, %v3126_v20 }
   0xd   : > { %s3697_s25 = smov (!%p268_p3, %s2594_s25), 1 }
   0xe   : > { %s2970_s28 = smul.u32 24, %s3697_s25  ;;  %s2600_s20 = sshll.u32 %s3697_s25, 2 }
   0xf   : > { %s276_s23 = scalar_lea.vmem %s3663_s7, %s2600_s20 }
  0x10   : > { %s272_s8 = scalar_lea.vmem %s3656_s0, %s2970_s28 }
  0x11   : > { %v3108_v6 = vld [vmem:[%s272_s8] sm:$0xff]   ;;  %v3110_v7 = vld [vmem:[%s272_s8 + $0x8] sm:$0xff]   ;;  %v3112_v8 = vld [vmem:[%s272_s8 + $0x10] sm:$0xff]  }
  0x12   : > { %v304_v9 = vshrl.u32 %v3108_v6, 16  ;;  %v306_v10 = vshll.u32 %v3108_v6, 16  ;;  %v311_v11 = vshll.u32 %v3110_v7, 16  ;;  %v319_v12 = vshll.u32 %v3112_v8, 16 }
  0x13   : > { %v323_v13 = vshrl.u32 %v3112_v8, 16  ;;  %v315_v23 = vshrl.u32 %v3110_v7, 16  ;;  %v475_v30 = vrot.slane %v3108_v6, 1  ;;  %v476_v31 = vrot.slane %v3110_v7, 1 }
  0x14   : > { %v308_v15 = vrot.slane %v306_v10, 1  ;;  %v313_v16 = vrot.slane %v311_v11, 1  ;;  %v321_v18 = vrot.slane %v319_v12, 1  ;;  %v478_v37 = vrot.slane %v3112_v8, 1 }
  0x15   : > { %v477_v35 = vsel %vm3669_vm5, %v475_v30, %v476_v31  ;;  %v560_v39 = vrot.slane %v304_v9, 1  ;;  %v561_v40 = vrot.slane %v306_v10, 2  ;;  %v564_v41 = vrot.slane %v311_v11, 2 }
  0x16   : > { %v309_v21 = vor.u32 %v308_v15, %v304_v9  ;;  %v325_v24 = vor.u32 %v323_v13, %v321_v18  ;;  %v317_v28 = vor.u32 %v315_v23, %v313_v16  ;;  %v479_v38 = vsel %vm3669_vm5, %v476_v31, %v478_v37 }
  0x17   : > { %v563_v42 = vrot.slane %v315_v23, 1  ;;  %v562_v43 = vor.u32 %v561_v40, %v560_v39  ;;  %v481_v45 = vsel %vm3669_vm5, %v478_v37, %v3126_v20  ;;  %v567_v47 = vrot.slane %v323_v13, 1  ;;  %v3224_v13 = vld [vmem:[%s3659_s3] sm:$0xff]  }
  0x18   : > { %v314_v26 = vsel %vm3667_vm3, %v309_v21, %v313_v16  ;;  %v330_v27 = vsel %vm3667_vm3, %v325_v24, %v3126_v20  ;;  %v322_v32 = vsel %vm3667_vm3, %v317_v28, %v321_v18  ;;  %v568_v48 = vrot.slane %v319_v12, 2 }
  0x19   : > { %2801 = vmatmul.mubr.msk.bf16.vlgmr.msra.gmra.mrb[0].mxu0 %vm331_vm4, %v314_v26  ;;  %2809 = vmatmul.mubr.msk.bf16.vlgmr.msra.gmra.mrb[0].mxu1 %vm331_vm4, %v330_v27  ;;  %v565_v44 = vor.u32 %v564_v41, %v563_v42  ;;  %v655_v49 = vrot.slane %v3108_v6, 2  ;;  %v656_v50 = vrot.slane %v3110_v7, 2  ;;  %v658_v55 = vrot.slane %v3112_v8, 2 }
  0x1a   : > { %2827 = vmatpush3.bf16.msra.mxu0 %v492_v22  ;;  %2813 = vmatpush3.bf16.msra.mxu1 %v412_v25  ;;  %v569_v51 = vor.u32 %v568_v48, %v567_v47 }
  0x1b   : > { %2804 = vmatprep.mubr.msk.bf16.mxu0 %vm3664_vm2, %v3037_v1  ;;  %2814 = vmatprep.mubr.msk.bf16.mxu1 %vm3664_vm2, %v3037_v1  ;;  %v566_v46 = vsel %vm3666_vm6, %v562_v43, %v565_v44  ;;  %v657_v52 = vsel %vm3668_vm7, %v655_v49, %v656_v50  ;;  %v659_v57 = vsel %vm3668_vm7, %v656_v50, %v658_v55 }
  0x1c   : > { %2840 = vmatprep.subr.bf16.mxu1 %v3037_v1  ;;  %2854 = vmatprep.subr.bf16.mxu0 %v3037_v1  ;;  %v570_v53 = vsel %vm3666_vm6, %v565_v44, %v569_v51  ;;  %v576_v58 = vsel %vm3666_vm6, %v569_v51, %v575_v56  ;;  %v661_v59 = vsel %vm3668_vm7, %v658_v55, %v574_v54 }
  0x21   : > { %2805 = vmatmul.mubr.msk.bf16.gmra.mrb[4].mxu0 %vm331_vm4, %v322_v32  ;;  %2815 = vmatmul.mubr.msk.bf16.vlgmr.msra.gmra.mrb[4].mxu1 %vm331_vm4, %v3108_v6 }
  0x22   : > { %2828 = vmatprep.mubr.msk.bf16.mxu0 %vm3664_vm2, %v3037_v1  ;;  %2841 = vmatpush3.bf16.msra.mxu1 %v587_v33 }
  0x23   : > { %2818 = vmatprep.mubr.msk.bf16.mxu1 %vm3664_vm2, %v3037_v1  ;;  %2868 = vmatprep.subr.bf16.mxu1 %v2999_v61 }
  0x29   : > { %2829 = vmatmul.mubr.msk.bf16.vlgmr.msra.gmra.mrb[8].mxu0 %vm331_vm4, %v477_v35  ;;  %2819 = vmatmul.mubr.msk.bf16.gmra.mrb[8].mxu1 %vm331_vm4, %v3110_v7  ;;  %v3215_v7 = vshrl.u32 %v737_v60, 7 }
  0x2a   : > { %2855 = vmatpush3.bf16.msra.mxu0 %v672_v36  ;;  %2822 = vmatprep.mubr.msk.bf16.mxu1 %vm3664_vm2, %v3037_v1 }
  0x2b   : > { %2832 = vmatprep.mubr.msk.bf16.mxu0 %vm3664_vm2, %v3037_v1  ;;  %2892 = vmatprep.subr.bf16.mxu0 %v3001_v63  ;;  %v3218_v11 = vadd.s32 8, %v3215_v7  ;;  %v3227_v16 = vmul.u32.u64.low 2863311531, %v3215_v7  ;;  %v3228_v17 = vmul.u32.u64.high 2863311531, %v3215_v7, %v3227_v16  ;;  %v3236_v28 = vadd.s32 16, %v3215_v7 }
  0x2c   : > { %v3240_v33 = vadd.s32 24, %v3215_v7  ;;  %v3247_v42 = vadd.s32 40, %v3215_v7 }
  0x2d   : > { %v3231_v21 = vmul.u32.u64.low 2863311531, %v3218_v11  ;;  %v3232_v22 = vmul.u32.u64.high 2863311531, %v3218_v11, %v3231_v21  ;;  %v750_v32 = vshrl.u32 %v3228_v17, 5 }
  0x2e   : > { %v3254_v48 = vmul.u32.u64.low 2863311531, %v3240_v33  ;;  %v3255_v49 = vmul.u32.u64.high 2863311531, %v3240_v33, %v3254_v48 }
  0x2f   : > { %v761_v37 = vshrl.u32 %v3232_v22, 5  ;;  %v751_v47 = vmul.u32 48, %v750_v32 }
  0x31   : > { %2833 = vmatmul.mubr.msk.bf16.gmra.mrb[12].mxu0 %vm331_vm4, %v479_v38  ;;  %2823 = vmatmul.mubr.msk.bf16.gmra.mrb[12].mxu1 %vm331_vm4, %v3112_v8  ;;  %v3244_v38 = vadd.s32 32, %v3215_v7  ;;  %v762_v50 = vmul.u32 48, %v761_v37  ;;  %v3041_v37 = vmov 1983009808  }
  0x32   : > { %2836 = vmatprep.mubr.msk.bf16.mxu0 %vm3664_vm2, %v3037_v1  ;;  %2842 = vmatprep.mubr.msk.bf16.mxu1 %vm3664_vm2, %v3037_v1 }
  0x39   : > { %2837 = vmatmul.mubr.msk.bf16.gmra.mrb[16].mxu0 %vm331_vm4, %v481_v45  ;;  %2843 = vmatmul.mubr.msk.bf16.vlgmr.msra.gmra.mrb[16].mxu1 %vm331_vm4, %v566_v46  ;;  %v3250_v45 = vmul.u32.u64.low 2863311531, %v3236_v28  ;;  %v3251_v46 = vmul.u32.u64.high 2863311531, %v3236_v28, %v3250_v45 }
  0x3a   : > { %2856 = vmatprep.mubr.msk.bf16.mxu0 %vm3664_vm2, %v3037_v1  ;;  %2846 = vmatprep.mubr.msk.bf16.mxu1 %vm3664_vm2, %v3037_v1 }
  0x3b   : > { %2869 = vmatpush3.bf16.msra.mxu1 %v2999_v61 }
  0x3c   : > { %2870 = vmatprep.subr.bf16.mxu1 %v3000_v62 }
  0x3f   : > { %2871 = vmatpush3.bf16.msra.mxu1 %v3000_v62 }
  0x40   : > { %2876 = vmatprep.subr.bf16.mxu1 %v3224_v13 }
  0x41   : > { %2857 = vmatmul.mubr.msk.bf16.vlgmr.msra.gmra.mrb[20].mxu0 %vm331_vm4, %v657_v52  ;;  %2847 = vmatmul.mubr.msk.bf16.gmra.mrb[20].mxu1 %vm331_vm4, %v570_v53  ;;  %v3258_v51 = vmul.u32.u64.low 2863311531, %v3244_v38  ;;  %v3259_v52 = vmul.u32.u64.high 2863311531, %v3244_v38, %v3258_v51  ;;  %v3262_v53 = vmul.u32.u64.low 2863311531, %v3247_v42  ;;  %v3263_v54 = vmul.u32.u64.high 2863311531, %v3247_v42, %v3262_v53 }
  0x42   : > { %2860 = vmatprep.mubr.msk.bf16.mxu0 %vm3664_vm2, %v3037_v1  ;;  %2850 = vmatprep.mubr.msk.bf16.mxu1 %vm3664_vm2, %v3037_v1 }
  0x43   : > { %2893 = vmatpush3.bf16.msra.mxu0 %v3001_v63  ;;  %v763_v63 = vsub.s32 %v3218_v11, %v762_v50 }
  0x44   : > { %2894 = vmatprep.subr.bf16.mxu0 %v3002_v0 }
  0x45   : > { %vm811_vm10 = vcmp.ne.s32.totalorder %v763_v63, 0  ;;  %vm817_vm11 = vcmp.lt.s32.totalorder %v763_v63, 0  ;;  %v829_v16 = vadd.s32 48, %v763_v63 }
  0x46   : > { %vm823_vm13 = vmand %vm817_vm11, %vm811_vm10 }
  0x47   : > { %2895 = vmatpush3.bf16.msra.mxu0 %v3002_v0 }
  0x48   : > { %2908 = vmatprep.subr.bf16.mxu0 %v3037_v1 }
  0x49   : > { %2861 = vmatmul.mubr.msk.bf16.gmra.mrb[24].mxu0 %vm331_vm4, %v659_v57  ;;  %2851 = vmatmul.mubr.msk.bf16.gmra.mrb[24].mxu1 %vm331_vm4, %v576_v58 }
  0x4a   : > { %2864 = vmatprep.mubr.msk.bf16.mxu0 %vm3664_vm2, %v3037_v1 }
  0x51   : > { %2865 = vmatmul.mubr.msk.bf16.gmra.mrb[28].mxu0 %vm331_vm4, %v661_v59  ;;  %v752_v59 = vsub.s32 %v3215_v7, %v751_v47 }
  0x53   : > { %vm810_vm8 = vcmp.ne.s32.totalorder %v752_v59, 0  ;;  %vm816_vm9 = vcmp.lt.s32.totalorder %v752_v59, 0 }
  0x54   : > { %vm822_vm12 = vmand %vm816_vm9, %vm810_vm8 }
  0xec   : > { %v382_v2 = vpop.f32.mrb[0].mxu0  ;;  %v398_v4 = vpop.f32.mrb[0].mxu1 }
  0xed   : > { %v2802_v3 = vpop.f32.mrb[1].mxu0  ;;  %v2810_v6 = vpop.f32.mrb[1].mxu1 }
  0xee   : > { %v385_v5 = vpop.f32.mrb[2].mxu0  ;;  %v401_v9 = vpop.f32.mrb[2].mxu1 }
  0xef   : > { %v2803_v8 = vpop.f32.mrb[3].mxu0  ;;  %v2811_v10 = vpop.f32.mrb[3].mxu1 }
  0xf0   : > { %v772_v8 = vshrl.u32 %v3251_v46, 5  ;;  %v783_v10 = vshrl.u32 %v3255_v49, 5 }
  0xf2   : > { %v784_v21 = vmul.u32 48, %v783_v10 }
  0xf4   : > { %v390_v12 = vpop.f32.mrb[4].mxu0  ;;  %v448_v14 = vpop.f32.mrb[4].mxu1 }
  0xf5   : > { %v2806_v15 = vpop.f32.mrb[5].mxu0  ;;  %v449_v18 = vadd.f32 %v448_v14, %v382_v2  ;;  %v2816_v19 = vpop.f32.mrb[5].mxu1  ;;  %v805_v14 = vshrl.u32 %v3263_v54, 5 }
  0xf6   : > { %v393_v20 = vpop.f32.mrb[6].mxu0  ;;  %v451_v23 = vpop.f32.mrb[6].mxu1 }
  0xf7   : > { %v2807_v24 = vpop.f32.mrb[7].mxu0  ;;  %v452_v25 = vadd.f32 %v451_v23, %v385_v5  ;;  %v2817_v26 = vpop.f32.mrb[7].mxu1 }
  0xfc   : > { %v528_v27 = vpop.f32.mrb[8].mxu0  ;;  %v456_v29 = vpop.f32.mrb[8].mxu1 }
  0xfd   : > { %v551_v30 = vadd.f32 %v528_v27, %v449_v18  ;;  %v2830_v31 = vpop.f32.mrb[9].mxu0  ;;  %v457_v34 = vadd.f32 %v456_v29, %v390_v12  ;;  %v2820_v35 = vpop.f32.mrb[9].mxu1  ;;  %v828_v12 = vadd.s32 48, %v752_v59  ;;  %v773_v18 = vmul.u32 48, %v772_v8 }
  0xfe   : > { %v531_v36 = vpop.f32.mrb[10].mxu0  ;;  %v459_v39 = vpop.f32.mrb[10].mxu1 }
  0xff   : > { %v552_v40 = vadd.f32 %v531_v36, %v452_v25  ;;  %v2831_v41 = vpop.f32.mrb[11].mxu0  ;;  %v460_v43 = vadd.f32 %v459_v39, %v393_v20  ;;  %v2821_v44 = vpop.f32.mrb[11].mxu1  ;;  %v834_v32 = vsel %vm822_vm12, %v828_v12, %v752_v59  ;;  %v903_v39 = vunpack.c.l.s4 %v3041_v37 }
 0x100   : > { %v835_v41 = vsel %vm823_vm13, %v829_v16, %v763_v63  ;;  %v785_v44 = vsub.s32 %v3240_v33, %v784_v21  ;;  %vm840_vm14 = vcmp.ge.s32.totalorder %v834_v32, 12  ;;  %vm846_vm15 = vcmp.lt.s32.totalorder %v834_v32, 42 }
 0x101   : > { %vm841_vm0 = vcmp.ge.s32.totalorder %v835_v41, 12  ;;  %vm847_vm4 = vcmp.lt.s32.totalorder %v835_v41, 42  ;;  %v904_v48 = vunpack.c.0.s8 %v903_v39  ;;  %vm3288_vm10 = vmand %vm840_vm14, %vm846_vm15 }
 0x102   : > { %vm813_vm11 = vcmp.ne.s32.totalorder %v785_v44, 0  ;;  %vm819_vm12 = vcmp.lt.s32.totalorder %v785_v44, 0  ;;  %vm3295_vm13 = vmand %vm841_vm0, %vm847_vm4  ;;  %v831_v63 = vadd.s32 48, %v785_v44 }
 0x103   : > { %vm825_vm0 = vmand %vm819_vm12, %vm813_vm11  ;;  %vm1272_vm11 = vcmask 1043459   ;;  %vm1274_vm12 = vcmask 1044484  }
 0x104   : > { %v536_v55 = vpop.f32.mrb[12].mxu0  ;;  %v464_v56 = vpop.f32.mrb[12].mxu1  ;;  %v3328_v16 = vsel %vm825_vm0, %v831_v63, %v785_v44 }
 0x105   : > { %v3265_v57 = vadd.f32 %v536_v55, %v457_v34  ;;  %v2834_v58 = vpop.f32.mrb[13].mxu0  ;;  %v465_v60 = vadd.f32 %v464_v56, %v398_v4  ;;  %v2824_v61 = vpop.f32.mrb[13].mxu1  ;;  %v794_v4 = vshrl.u32 %v3259_v52, 5  ;;  %v806_v34 = vmul.u32 48, %v805_v14 }
 0x106   : > { %v539_v62 = vpop.f32.mrb[14].mxu0  ;;  %v467_v0 = vpop.f32.mrb[14].mxu1 }
 0x107   : > { %v3269_v2 = vadd.f32 %v539_v62, %v460_v43  ;;  %v2835_v3 = vpop.f32.mrb[15].mxu0  ;;  %v468_v5 = vadd.f32 %v467_v0, %v401_v9  ;;  %v2825_v6 = vpop.f32.mrb[15].mxu1  ;;  %v795_v26 = vmul.u32 48, %v794_v4  ;;  %v774_v43 = vsub.s32 %v3236_v28, %v773_v18 }
 0x108   : > { %v807_v45 = vsub.s32 %v3247_v42, %v806_v34 }
 0x109   : > { %vm812_vm8 = vcmp.ne.s32.totalorder %v774_v43, 0  ;;  %vm818_vm9 = vcmp.lt.s32.totalorder %v774_v43, 0  ;;  %v830_v62 = vadd.s32 48, %v774_v43 }
 0x10a   : > { %vm3302_vm14 = vmand %vm818_vm9, %vm812_vm8  ;;  %vm815_vm15 = vcmp.ne.s32.totalorder %v807_v45, 0  ;;  %vm821_vm3 = vcmp.lt.s32.totalorder %v807_v45, 0  ;;  %v833_v8 = vadd.s32 48, %v807_v45  ;;  %vm1027_vm9 = vcmask 254976  }
 0x10b   : > { %vm827_vm8 = vmand %vm821_vm3, %vm815_vm15  ;;  %vm3671_vm15 = vcmask 1047559  }
 0x10c   : > { %v544_v15 = vpop.f32.mrb[16].mxu0  ;;  %v623_v9 = vpop.f32.mrb[16].mxu1 }
 0x10d   : > { %v3275_v19 = vadd.f32 %v544_v15, %v465_v60  ;;  %v2838_v20 = vpop.f32.mrb[17].mxu0  ;;  %v646_v23 = vadd.f32 %v623_v9, %v551_v30  ;;  %v2844_v24 = vpop.f32.mrb[17].mxu1  ;;  %v796_v30 = vsub.s32 %v3244_v38, %v795_v26  ;;  %v3326_v15 = vsel %vm3302_vm14, %v830_v62, %v774_v43 }
 0x10e   : > { %v547_v25 = vpop.f32.mrb[18].mxu0  ;;  %v626_v29 = vpop.f32.mrb[18].mxu1  ;;  %v3336_v24 = vsel %vm827_vm8, %v833_v8, %v807_v45  ;;  %vm848_vm3 = vcmp.lt.s32.totalorder %v3326_v15, 42  ;;  %vm3672_vm14 = vcmask 1046534  }
 0x10f   : > { %v3277_v27 = vadd.f32 %v547_v25, %v468_v5  ;;  %v2839_v31 = vpop.f32.mrb[19].mxu0  ;;  %v647_v35 = vadd.f32 %v626_v29, %v552_v40  ;;  %v2845_v36 = vpop.f32.mrb[19].mxu1  ;;  %v3286_v40 = vld [vmem:[%s3658_s2] ss:$0 sm:$0xff]  ;;  %vm814_vm2 = vcmp.ne.s32.totalorder %v796_v30, 0  ;;  %vm820_vm6 = vcmp.lt.s32.totalorder %v796_v30, 0 }
 0x110   : > { %vm3317_vm4 = vmand %vm820_vm6, %vm814_vm2  ;;  %v832_v6 = vadd.s32 48, %v796_v30  ;;  %vm842_vm2 = vcmp.ge.s32.totalorder %v3326_v15, 12  ;;  %vm1268_vm6 = vcmask 1041409   ;;  %vm845_vm1 = vcmp.ge.s32.totalorder %v3336_v24, 12 }
 0x111   : > { %vm854_vm8 = vmand %vm842_vm2, %vm848_vm3  ;;  %vm851_vm0 = vcmp.lt.s32.totalorder %v3336_v24, 42  ;;  %vm3682_vm2 = vcmp.ge.s32.totalorder %v3328_v16, 12 }
 0x114   : > { %v708_v47 = vpop.f32.mrb[20].mxu0  ;;  %v631_v49 = vpop.f32.mrb[20].mxu1 }
 0x115   : > { %v731_v50 = vadd.f32 %v708_v47, %v646_v23  ;;  %v2858_v38 = vpop.f32.mrb[21].mxu0  ;;  %v648_v42 = vadd.f32 %v631_v49, %v3265_v57  ;;  %v2848_v51 = vpop.f32.mrb[21].mxu1  ;;  %v3307_v57 = vsub.s32 %v904_v48, %v3215_v7  ;;  %v3334_v23 = vsel %vm3317_vm4, %v832_v6, %v796_v30 }
 0x116   : > { %v711_v52 = vpop.f32.mrb[22].mxu0  ;;  %v634_v55 = vpop.f32.mrb[22].mxu1  ;;  %vm849_vm4 = vcmp.lt.s32.totalorder %v3328_v16, 42  ;;  %vm844_vm7 = vcmp.ge.s32.totalorder %v3334_v23, 12  ;;  %vm850_vm5 = vcmp.lt.s32.totalorder %v3334_v23, 42 }
 0x117   : > { %v865_v54 = vadd.f32 %v3286_v40, %v731_v50  ;;  %v732_v56 = vadd.f32 %v711_v52, %v647_v35  ;;  %v2859_v58 = vpop.f32.mrb[23].mxu0  ;;  %v3310_v60 = vadd.f32 %v634_v55, %v3269_v2  ;;  %v2849_v61 = vpop.f32.mrb[23].mxu1  ;;  %vm855_vm3 = vmand %vm3682_vm2, %vm849_vm4  ;;  %vm3689_vm2 = vsmask.f32 6400 }
 0x118   : > { %vm857_vm4 = vmand %vm845_vm1, %vm851_vm0  ;;  %vm3685_vm1 = vcmask 1043456   ;;  %vm3688_vm0 = vsmask.f32 7424 }
 0x119   : > { %v871_v0 = vmax.f32 %v865_v54, 0.0  ;;  %v866_v3 = vadd.f32 %v3286_v40, %v732_v56 }
 0x11b   : > { %v889_v2 = vsel %vm3288_vm10, %v871_v0, 0.0  ;;  %v872_v10 = vmax.f32 %v866_v3, 0.0  ;;  %vm1270_vm10 = vcmask 1042434  }
 0x11c   : > { %v901_v4 = vcombine.high %v889_v2, %v889_v2  ;;  %v908_v12 = vrot.slane %v889_v2, %v3307_v57  ;;  %v716_v14 = vpop.f32.mrb[24].mxu0  ;;  %v639_v9 = vpop.f32.mrb[24].mxu1 }
 0x11d   : > { %v890_v18 = vsel %vm3295_vm13, %v872_v10, 0.0  ;;  %v733_v20 = vadd.f32 %v716_v14, %v648_v42  ;;  %v2862_v21 = vpop.f32.mrb[25].mxu0  ;;  %v2852_v32 = vpop.f32.mrb[25].mxu1  ;;  %v3344_v37 = vadd.f32 %v639_v9, %v3275_v19  ;;  %vm3673_vm13 = vcmask 1045509  }
 0x11e   : > { %v915_v25 = vrot.slane %v901_v4, %v3307_v57  ;;  %v916_v26 = vcombine.high %v908_v12, %v908_v12  ;;  %v1028_v29 = vsel %vm1027_vm9, %v908_v12, -inf  ;;  %v918_v31 = vcombine.high %v890_v18, %v890_v18  ;;  %v3340_v34 = vpop.f32.mrb[26].mxu0  ;;  %v3349_v41 = vpop.f32.mrb[26].mxu1 }
 0x11f   : > { %v1029_v35 = vrot.slane %v1028_v29, 4  ;;  %v925_v36 = vrot.slane %v890_v18, %v3307_v57  ;;  %v3347_v39 = vadd.f32 %v3286_v40, %v733_v20  ;;  %v2863_v43 = vpop.f32.mrb[27].mxu0  ;;  %v2853_v48 = vpop.f32.mrb[27].mxu1 }
 0x120   : > { %v917_v44 = vcombine.high %v915_v25, %v915_v25  ;;  %v1035_v30 = vsel %vm1027_vm9, %v916_v26, -inf  ;;  %v1042_v45 = vsel %vm1027_vm9, %v915_v25, -inf  ;;  %v932_v47 = vrot.slane %v918_v31, %v3307_v57 }
 0x121   : > { %v1030_v49 = vmax.f32 %v1028_v29, %v1029_v35  ;;  %v1036_v50 = vrot.slane %v1035_v30, 4  ;;  %v1043_v33 = vrot.slane %v1042_v45, 4  ;;  %v933_v38 = vcombine.high %v925_v36, %v925_v36 }
 0x122   : > { %v1049_v19 = vsel %vm1027_vm9, %v917_v44, -inf  ;;  %v934_v42 = vcombine.high %v932_v47, %v932_v47  ;;  %v1056_v51 = vsel %vm1027_vm9, %v925_v36, -inf  ;;  %v1070_v52 = vsel %vm1027_vm9, %v932_v47, -inf }
 0x123   : > { %v1031_v53 = vrot.slane %v1030_v49, 2  ;;  %v1037_v54 = vmax.f32 %v1035_v30, %v1036_v50  ;;  %v1044_v55 = vmax.f32 %v1042_v45, %v1043_v33  ;;  %v1050_v56 = vrot.slane %v1049_v19, 4 }
 0x124   : > { %v1057_v58 = vrot.slane %v1056_v51, 4  ;;  %v1063_v59 = vsel %vm1027_vm9, %v933_v38, -inf  ;;  %v1071_v61 = vrot.slane %v1070_v52, 4  ;;  %v1077_v62 = vsel %vm1027_vm9, %v934_v42, -inf  ;;  %v3361_v63 = vpop.f32.mrb[28].mxu0 }
 0x125   : > { %v1032_v0 = vmax.f32 %v1030_v49, %v1031_v53  ;;  %v1038_v3 = vrot.slane %v1037_v54, 2  ;;  %v1045_v5 = vrot.slane %v1044_v55, 2  ;;  %v1051_v6 = vmax.f32 %v1049_v19, %v1050_v56  ;;  %v2866_v8 = vpop.f32.mrb[29].mxu0 }
 0x126   : > { %v1058_v2 = vmax.f32 %v1056_v51, %v1057_v58  ;;  %v1064_v10 = vrot.slane %v1063_v59, 4  ;;  %v1072_v4 = vmax.f32 %v1070_v52, %v1071_v61  ;;  %v1078_v12 = vrot.slane %v1077_v62, 4  ;;  %v3363_v14 = vpop.f32.mrb[30].mxu0 }
 0x127   : > { %v1033_v18 = vrot.slane %v1032_v0, 1  ;;  %v1039_v9 = vmax.f32 %v1037_v54, %v1038_v3  ;;  %v1046_v20 = vmax.f32 %v1044_v55, %v1045_v5  ;;  %v1052_v21 = vrot.slane %v1051_v6, 2  ;;  %v2867_v25 = vpop.f32.mrb[31].mxu0 }
 0x128   : > { %v1059_v26 = vrot.slane %v1058_v2, 2  ;;  %v1065_v29 = vmax.f32 %v1063_v59, %v1064_v10  ;;  %v1073_v31 = vrot.slane %v1072_v4, 2  ;;  %v1079_v32 = vmax.f32 %v1077_v62, %v1078_v12 }
 0x129   : > { %v1034_v35 = vmax.f32 %v1032_v0, %v1033_v18  ;;  %v1040_v36 = vrot.slane %v1039_v9, 1  ;;  %v1047_v43 = vrot.slane %v1046_v20, 1  ;;  %v1053_v44 = vmax.f32 %v1051_v6, %v1052_v21 }
 0x12a   : > { %v1060_v30 = vmax.f32 %v1058_v2, %v1059_v26  ;;  %v1066_v45 = vrot.slane %v1065_v29, 2  ;;  %v1074_v47 = vmax.f32 %v1072_v4, %v1073_v31  ;;  %v1080_v48 = vrot.slane %v1079_v32, 2 }
 0x12b   : > { %v1041_v49 = vmax.f32 %v1039_v9, %v1040_v36  ;;  %v1048_v50 = vmax.f32 %v1046_v20, %v1047_v43  ;;  %v1054_v33 = vrot.slane %v1053_v44, 1  ;;  %v1196_v38 = vpack.c.bf16 %v1034_v35, %v1034_v35 }
 0x12c   : > { %v1061_v19 = vrot.slane %v1060_v30, 1  ;;  %v1067_v42 = vmax.f32 %v1065_v29, %v1066_v45  ;;  %v1075_v51 = vrot.slane %v1074_v47, 1  ;;  %v1081_v52 = vmax.f32 %v1079_v32, %v1080_v48 }
 0x12d   : > { %v1055_v53 = vmax.f32 %v1053_v44, %v1054_v33  ;;  %v1197_v54 = vpack.c.bf16 %v1041_v49, %v1041_v49  ;;  %v1198_v55 = vpack.c.bf16 %v1048_v50, %v1048_v50  ;;  %v1244_v56 = vunpack.c.l.b16 %v1196_v38 }
 0x12e   : > { %v1062_v58 = vmax.f32 %v1060_v30, %v1061_v19  ;;  %v1068_v59 = vrot.slane %v1067_v42, 1  ;;  %v1076_v61 = vmax.f32 %v1074_v47, %v1075_v51  ;;  %v1082_v62 = vrot.slane %v1081_v52, 1 }
 0x12f   : > { %v1199_v0 = vpack.c.bf16 %v1055_v53, %v1055_v53  ;;  %v1245_v3 = vunpack.c.l.b16 %v1197_v54  ;;  %v1246_v5 = vunpack.c.l.b16 %v1198_v55  ;;  %v873_v6 = vmax.f32 %v3347_v39, 0.0 }
 0x130   : > { %v1069_v8 = vmax.f32 %v1067_v42, %v1068_v59  ;;  %v1083_v2 = vmax.f32 %v1081_v52, %v1082_v62  ;;  %v1200_v10 = vpack.c.bf16 %v1062_v58, %v1062_v58  ;;  %v1202_v4 = vpack.c.bf16 %v1076_v61, %v1076_v61 }
 0x131   : > { %v1247_v12 = vunpack.c.l.b16 %v1199_v0  ;;  %v1269_v15 = vsel %vm1268_vm6, %v1245_v3, %v1244_v56  ;;  %v891_v18 = vsel %vm854_vm8, %v873_v6, 0.0  ;;  %v651_v9 = vadd.f32 %v3349_v41, %v3277_v27  ;;  %vm3407_vm8 = vmand %vm844_vm7, %vm850_vm5 }
 0x132   : > { %v1271_v20 = vsel %vm1270_vm10, %v1246_v5, %v1269_v15  ;;  %v1201_v21 = vpack.c.bf16 %v1069_v8, %v1069_v8  ;;  %v1203_v25 = vpack.c.bf16 %v1083_v2, %v1083_v2  ;;  %v1248_v39 = vunpack.c.l.b16 %v1200_v10 }
 0x133   : > { %v1250_v26 = vunpack.c.l.b16 %v1202_v4  ;;  %v1273_v29 = vsel %vm1272_vm11, %v1247_v12, %v1271_v20  ;;  %v935_v31 = vcombine.high %v891_v18, %v891_v18  ;;  %v942_v32 = vrot.slane %v891_v18, %v3307_v57 }
 0x134   : > { %v1249_v35 = vunpack.c.l.b16 %v1201_v21  ;;  %v1251_v36 = vunpack.c.l.b16 %v1203_v25  ;;  %v1275_v43 = vsel %vm1274_vm12, %v1248_v39, %v1273_v29  ;;  %v734_v44 = vadd.f32 %v3340_v34, %v3310_v60 }
 0x135   : > { %v949_v27 = vrot.slane %v935_v31, %v3307_v57  ;;  %v950_v41 = vcombine.high %v942_v32, %v942_v32  ;;  %v1084_v30 = vsel %vm1027_vm9, %v942_v32, -inf  ;;  %v735_v45 = vadd.f32 %v3361_v63, %v3344_v37 }
 0x136   : > { %v1277_v47 = vsel %vm3673_vm13, %v1249_v35, %v1275_v43  ;;  %v1085_v48 = vrot.slane %v1084_v30, 4  ;;  %v868_v49 = vadd.f32 %v3286_v40, %v734_v44  ;;  %v736_v50 = vadd.f32 %v3363_v14, %v651_v9 }
 0x137   : > { %v1279_v33 = vsel %vm3672_vm14, %v1250_v26, %v1277_v47  ;;  %v951_v38 = vcombine.high %v949_v27, %v949_v27  ;;  %v1091_v60 = vsel %vm1027_vm9, %v950_v41, -inf  ;;  %v1098_v34 = vsel %vm1027_vm9, %v949_v27, -inf }
 0x138   : > { %v3396_v19 = vsel %vm3671_vm15, %v1251_v36, %v1279_v33  ;;  %v1086_v42 = vmax.f32 %v1084_v30, %v1085_v48  ;;  %v1092_v51 = vrot.slane %v1091_v60, 4  ;;  %v1099_v37 = vrot.slane %v1098_v34, 4 }
 0x139   : > { %v1105_v63 = vsel %vm1027_vm9, %v951_v38, -inf  ;;  %v874_v14 = vmax.f32 %v868_v49, 0.0  ;;  %v869_v53 = vadd.f32 %v3286_v40, %v735_v45  ;;  %v870_v54 = vadd.f32 %v3286_v40, %v736_v50 }
 0x13a   : > { %v1087_v55 = vrot.slane %v1086_v42, 2  ;;  %v1093_v56 = vmax.f32 %v1091_v60, %v1092_v51  ;;  %v1100_v58 = vmax.f32 %v1098_v34, %v1099_v37  ;;  %v1106_v16 = vrot.slane %v1105_v63, 4 }
 0x13b   : > { %v892_v59 = vsel %vm855_vm3, %v874_v14, 0.0  ;;  %v875_v61 = vmax.f32 %v869_v53, 0.0  ;;  %v876_v23 = vmax.f32 %v870_v54, 0.0  ;;  %vm1335_vm5 = vcmask 261120  }
 0x13c   : > { %v1088_v62 = vmax.f32 %v1086_v42, %v1087_v55  ;;  %v1094_v0 = vrot.slane %v1093_v56, 2  ;;  %v1101_v3 = vrot.slane %v1100_v58, 2  ;;  %v1107_v5 = vmax.f32 %v1105_v63, %v1106_v16 }
 0x13d   : > { %v952_v6 = vcombine.high %v892_v59, %v892_v59  ;;  %v959_v8 = vrot.slane %v892_v59, %v3307_v57  ;;  %v893_v40 = vsel %vm3407_vm8, %v875_v61, 0.0  ;;  %v3420_v2 = vsel %vm857_vm4, %v876_v23, 0.0 }
 0x13e   : > { %v1089_v10 = vrot.slane %v1088_v62, 1  ;;  %v1095_v4 = vmax.f32 %v1093_v56, %v1094_v0  ;;  %v1102_v12 = vmax.f32 %v1100_v58, %v1101_v3  ;;  %v1108_v24 = vrot.slane %v1107_v5, 2 }
 0x13f   : > { %v966_v15 = vrot.slane %v952_v6, %v3307_v57  ;;  %v967_v18 = vcombine.high %v959_v8, %v959_v8  ;;  %v1112_v9 = vsel %vm1027_vm9, %v959_v8, -inf  ;;  %v969_v20 = vcombine.high %v893_v40, %v893_v40 }
 0x140   : > { %v1090_v21 = vmax.f32 %v1088_v62, %v1089_v10  ;;  %v1096_v25 = vrot.slane %v1095_v4, 1  ;;  %v1103_v39 = vrot.slane %v1102_v12, 1  ;;  %v1109_v26 = vmax.f32 %v1107_v5, %v1108_v24 }
 0x141   : > { %v968_v29 = vcombine.high %v966_v15, %v966_v15  ;;  %v1113_v31 = vrot.slane %v1112_v9, 4  ;;  %v1119_v32 = vsel %vm1027_vm9, %v967_v18, -inf  ;;  %v1126_v35 = vsel %vm1027_vm9, %v966_v15, -inf }
 0x142   : > { %v1097_v36 = vmax.f32 %v1095_v4, %v1096_v25  ;;  %v1104_v43 = vmax.f32 %v1102_v12, %v1103_v39  ;;  %v1110_v44 = vrot.slane %v1109_v26, 1  ;;  %v1204_v27 = vpack.c.bf16 %v1090_v21, %v1090_v21 }
 0x143   : > { %v1114_v41 = vmax.f32 %v1112_v9, %v1113_v31  ;;  %v1120_v30 = vrot.slane %v1119_v32, 4  ;;  %v1127_v45 = vrot.slane %v1126_v35, 4  ;;  %v1133_v47 = vsel %vm1027_vm9, %v968_v29, -inf }
 0x144   : > { %v1111_v48 = vmax.f32 %v1109_v26, %v1110_v44  ;;  %v1205_v49 = vpack.c.bf16 %v1097_v36, %v1097_v36  ;;  %v1206_v50 = vpack.c.bf16 %v1104_v43, %v1104_v43  ;;  %v1252_v33 = vunpack.c.l.b16 %v1204_v27 }
 0x145   : > { %v1115_v38 = vrot.slane %v1114_v41, 2  ;;  %v1121_v60 = vmax.f32 %v1119_v32, %v1120_v30  ;;  %v1128_v34 = vmax.f32 %v1126_v35, %v1127_v45  ;;  %v1134_v42 = vrot.slane %v1133_v47, 4 }
 0x146   : > { %v1207_v51 = vpack.c.bf16 %v1111_v48, %v1111_v48  ;;  %v1253_v37 = vunpack.c.l.b16 %v1205_v49  ;;  %v1254_v63 = vunpack.c.l.b16 %v1206_v50  ;;  %v976_v14 = vrot.slane %v893_v40, %v3307_v57 }
 0x147   : > { %v1116_v52 = vmax.f32 %v1114_v41, %v1115_v38  ;;  %v1122_v53 = vrot.slane %v1121_v60, 2  ;;  %v1129_v54 = vrot.slane %v1128_v34, 2  ;;  %v1135_v55 = vmax.f32 %v1133_v47, %v1134_v42 }
 0x148   : > { %v1255_v56 = vunpack.c.l.b16 %v1207_v51  ;;  %v1282_v58 = vsel %vm1268_vm6, %v1253_v37, %v1252_v33  ;;  %v983_v16 = vrot.slane %v969_v20, %v3307_v57  ;;  %v984_v59 = vcombine.high %v976_v14, %v976_v14 }
 0x149   : > { %v1283_v61 = vsel %vm1270_vm10, %v1254_v63, %v1282_v58  ;;  %v1117_v23 = vrot.slane %v1116_v52, 1  ;;  %v1123_v62 = vmax.f32 %v1121_v60, %v1122_v53  ;;  %v1130_v0 = vmax.f32 %v1128_v34, %v1129_v54 }
 0x14a   : > { %v1136_v3 = vrot.slane %v1135_v55, 2  ;;  %v1284_v5 = vsel %vm1272_vm11, %v1255_v56, %v1283_v61  ;;  %v985_v6 = vcombine.high %v983_v16, %v983_v16  ;;  %v1140_v8 = vsel %vm1027_vm9, %v976_v14, -inf }
 0x14b   : > { %v1118_v40 = vmax.f32 %v1116_v52, %v1117_v23  ;;  %v1124_v10 = vrot.slane %v1123_v62, 1  ;;  %v1131_v4 = vrot.slane %v1130_v0, 1  ;;  %v1141_v12 = vrot.slane %v1140_v8, 4 }
 0x14c   : > { %v1137_v24 = vmax.f32 %v1135_v55, %v1136_v3  ;;  %v1147_v15 = vsel %vm1027_vm9, %v984_v59, -inf  ;;  %v1154_v18 = vsel %vm1027_vm9, %v983_v16, -inf  ;;  %v1161_v9 = vsel %vm1027_vm9, %v985_v6, -inf }
 0x14d   : > { %v1125_v20 = vmax.f32 %v1123_v62, %v1124_v10  ;;  %v1132_v21 = vmax.f32 %v1130_v0, %v1131_v4  ;;  %v1208_v25 = vpack.c.bf16 %v1118_v40, %v1118_v40  ;;  %v1142_v39 = vmax.f32 %v1140_v8, %v1141_v12 }
 0x14e   : > { %v1138_v26 = vrot.slane %v1137_v24, 1  ;;  %v1148_v29 = vrot.slane %v1147_v15, 4  ;;  %v1155_v31 = vrot.slane %v1154_v18, 4  ;;  %v1162_v32 = vrot.slane %v1161_v9, 4 }
 0x14f   : > { %v1209_v35 = vpack.c.bf16 %v1125_v20, %v1125_v20  ;;  %v1210_v36 = vpack.c.bf16 %v1132_v21, %v1132_v21  ;;  %v1256_v43 = vunpack.c.l.b16 %v1208_v25  ;;  %v1143_v44 = vrot.slane %v1142_v39, 2 }
 0x150   : > { %v1139_v27 = vmax.f32 %v1137_v24, %v1138_v26  ;;  %v1149_v41 = vmax.f32 %v1147_v15, %v1148_v29  ;;  %v1156_v30 = vmax.f32 %v1154_v18, %v1155_v31  ;;  %v1163_v45 = vmax.f32 %v1161_v9, %v1162_v32 }
 0x151   : > { %v1257_v47 = vunpack.c.l.b16 %v1209_v35  ;;  %v1258_v48 = vunpack.c.l.b16 %v1210_v36  ;;  %v1285_v49 = vsel %vm1274_vm12, %v1256_v43, %v1284_v5  ;;  %v1144_v50 = vmax.f32 %v1142_v39, %v1143_v44 }
 0x152   : > { %v1211_v33 = vpack.c.bf16 %v1139_v27, %v1139_v27  ;;  %v1150_v38 = vrot.slane %v1149_v41, 2  ;;  %v1157_v60 = vrot.slane %v1156_v30, 2  ;;  %v1164_v34 = vrot.slane %v1163_v45, 2 }
 0x153   : > { %v1286_v42 = vsel %vm3673_vm13, %v1257_v47, %v1285_v49  ;;  %v1145_v51 = vrot.slane %v1144_v50, 1  ;;  %v986_v37 = vcombine.high %v3420_v2, %v3420_v2  ;;  %v993_v63 = vrot.slane %v3420_v2, %v3307_v57 }
 0x154   : > { %v1259_v14 = vunpack.c.l.b16 %v1211_v33  ;;  %v1287_v52 = vsel %vm3672_vm14, %v1258_v48, %v1286_v42  ;;  %v1151_v53 = vmax.f32 %v1149_v41, %v1150_v38  ;;  %v1158_v54 = vmax.f32 %v1156_v30, %v1157_v60 }
 0x155   : > { %v1146_v55 = vmax.f32 %v1144_v50, %v1145_v51  ;;  %v1165_v56 = vmax.f32 %v1163_v45, %v1164_v34  ;;  %v1000_v58 = vrot.slane %v986_v37, %v3307_v57  ;;  %v1001_v16 = vcombine.high %v993_v63, %v993_v63 }
 0x156   : > { %v1288_v59 = vsel %vm3671_vm15, %v1259_v14, %v1287_v52  ;;  %v1152_v61 = vrot.slane %v1151_v53, 1  ;;  %v1159_v23 = vrot.slane %v1158_v54, 1  ;;  %v1168_v62 = vsel %vm1027_vm9, %v993_v63, -inf }
 0x157   : > { %v1166_v0 = vrot.slane %v1165_v56, 1  ;;  %v1212_v3 = vpack.c.bf16 %v1146_v55, %v1146_v55  ;;  %v1002_v5 = vcombine.high %v1000_v58, %v1000_v58  ;;  %v1169_v2 = vrot.slane %v1168_v62, 4 }
 0x158   : > { %v1153_v6 = vmax.f32 %v1151_v53, %v1152_v61  ;;  %v1160_v8 = vmax.f32 %v1158_v54, %v1159_v23  ;;  %v1175_v40 = vsel %vm1027_vm9, %v1001_v16, -inf  ;;  %v1182_v10 = vsel %vm1027_vm9, %v1000_v58, -inf }
 0x159   : > { %v1167_v4 = vmax.f32 %v1165_v56, %v1166_v0  ;;  %v1170_v12 = vmax.f32 %v1168_v62, %v1169_v2  ;;  %v1176_v24 = vrot.slane %v1175_v40, 4  ;;  %v1183_v9 = vrot.slane %v1182_v10, 4 }
 0x15a   : > { %v1213_v15 = vpack.c.bf16 %v1153_v6, %v1153_v6  ;;  %v1214_v18 = vpack.c.bf16 %v1160_v8, %v1160_v8  ;;  %v1189_v20 = vsel %vm1027_vm9, %v1002_v5, -inf  ;;  %v1260_v21 = vunpack.c.l.b16 %v1212_v3 }
 0x15b   : > { %v1171_v25 = vrot.slane %v1170_v12, 2  ;;  %v1177_v39 = vmax.f32 %v1175_v40, %v1176_v24  ;;  %v1190_v26 = vrot.slane %v1189_v20, 4  ;;  %v1215_v29 = vpack.c.bf16 %v1167_v4, %v1167_v4 }
 0x15c   : > { %v1261_v31 = vunpack.c.l.b16 %v1213_v15  ;;  %v1184_v32 = vmax.f32 %v1182_v10, %v1183_v9  ;;  %v3450_v35 = vpack.c.b16 %v1288_v59, %v3396_v19  ;;  %v1262_v36 = vunpack.c.l.b16 %v1214_v18 }
 0x15d   : > { %v1172_v43 = vmax.f32 %v1170_v12, %v1171_v25  ;;  %v1178_v44 = vrot.slane %v1177_v39, 2  ;;  %v1191_v27 = vmax.f32 %v1189_v20, %v1190_v26  ;;  %v1263_v49 = vunpack.c.l.b16 %v1215_v29 }
 0x15e   : > { %v1289_v41 = vsel %vm1268_vm6, %v1261_v31, %v1260_v21  ;;  %v1185_v30 = vrot.slane %v1184_v32, 2  ;;  %v1312_v61 = vshll.u32 %v3450_v35, 16  ;;  %v1310_v3 = vshrl.u32 %v3450_v35, 16 }
 0x15f   : > { %v1173_v45 = vrot.slane %v1172_v43, 1  ;;  %v1179_v47 = vmax.f32 %v1177_v39, %v1178_v44  ;;  %v1192_v48 = vrot.slane %v1191_v27, 2  ;;  %v1290_v33 = vsel %vm1270_vm10, %v1262_v36, %v1289_v41  ;;  %v3004_v44 = vld [vmem:[%s3659_s3 + $0x8] sm:$0xff]   ;;  %v3005_v41 = vld [vmem:[%s3659_s3 + $0x20] sm:$0xff]  }
 0x160   : > { %v1186_v50 = vmax.f32 %v1184_v32, %v1185_v30  ;;  %v1291_v14 = vsel %vm1272_vm11, %v1263_v49, %v1290_v33  ;;  %v1314_v6 = vrot.slane %v1312_v61, 1  ;;  %v1537_v40 = vrot.slane %v1310_v3, 1  ;;  %v3008_v30 = vld [vmem:[%s3659_s3 + $0x48] sm:$0xff]   ;;  %v3012_v49 = vld [vmem:[%s3661_s5 + $0x10] sm:$0xff]   ;;  %v3014_v33 = vld [vmem:[%s3661_s5 + $0x18] sm:$0xff]  }
 0x161   : > { %v1174_v38 = vmax.f32 %v1172_v43, %v1173_v45  ;;  %v1180_v60 = vrot.slane %v1179_v47, 1  ;;  %v1193_v34 = vmax.f32 %v1191_v27, %v1192_v48  ;;  %v1538_v10 = vrot.slane %v1312_v61, 2  ;;  %v3009_v45 = vld [vmem:[%s3661_s5] sm:$0xff]  }
 0x162   : > { %v1187_v42 = vrot.slane %v1186_v50, 1  ;;  %v1460_v4 = vrot.slane %v3450_v35, 1  ;;  %v1315_v9 = vor.u32 %v1314_v6, %v1310_v3  ;;  %v1618_v20 = vrot.slane %v3450_v35, 2  ;;  %v3011_v48 = vld [vmem:[%s3661_s5 + $0x20] sm:$0xff]  }
 0x163   : > { %v1181_v19 = vmax.f32 %v1179_v47, %v1180_v60  ;;  %v1194_v51 = vrot.slane %v1193_v34, 1  ;;  %v1216_v37 = vpack.c.bf16 %v1174_v38, %v1174_v38  ;;  %vm3686_vm7 = vcmask 1046528   ;;  %v3010_v47 = vld [vmem:[%s3661_s5 + $0x8] sm:$0xff]   ;;  %v3015_v38 = vld [vmem:[%s3661_s5 + $0x30] sm:$0xff]   ;;  %v3017_v60 = vld [vmem:[%s3661_s5 + $0x38] sm:$0xff]  }
 0x164   : > { %v1188_v63 = vmax.f32 %v1186_v50, %v1187_v42  ;;  %vm3687_vm9 = vcmask 1045504   ;;  %v1539_v36 = vor.u32 %v1538_v10, %v1537_v40  ;;  %vm3690_vm3 = vmmov 0   ;;  %v3013_v50 = vld [vmem:[%s3661_s5 + $0x28] sm:$0xff]  }
 0x165   : > { %v1195_v52 = vmax.f32 %v1193_v34, %v1194_v51  ;;  %v1217_v53 = vpack.c.bf16 %v1181_v19, %v1181_v19  ;;  %v1264_v54 = vunpack.c.l.b16 %v1216_v37 }
 0x166   : > { %v1218_v55 = vpack.c.bf16 %v1188_v63, %v1188_v63 }
 0x167   : > { %v1219_v56 = vpack.c.bf16 %v1195_v52, %v1195_v52  ;;  %v1265_v58 = vunpack.c.l.b16 %v1217_v53  ;;  %v1292_v16 = vsel %vm1274_vm12, %v1264_v54, %v1291_v14  ;;  %v1718_v14 = vshrl.u32 %v3251_v46, 4 }
 0x168   : > { %v1266_v59 = vunpack.c.l.b16 %v1218_v55  ;;  %v1696_v53 = vshrl.u32 %v3228_v17, 4 }
 0x169   : > { %v1267_v23 = vunpack.c.l.b16 %v1219_v56  ;;  %v1293_v62 = vsel %vm3673_vm13, %v1265_v58, %v1292_v16  ;;  %v1719_v56 = vmul.u32 24, %v1718_v14 }
 0x16a   : > { %v1294_v0 = vsel %vm3672_vm14, %v1266_v59, %v1293_v62  ;;  %v1697_v59 = vmul.u32 24, %v1696_v53 }
 0x16b   : > { %v1295_v5 = vsel %vm3671_vm15, %v1267_v23, %v1294_v0  ;;  %v1720_v3 = vsub.s32 %v3236_v28, %v1719_v56 }
 0x16c   : > { %v1297_v2 = vpack.c.b16 %v1295_v5, %v1295_v5  ;;  %v1707_v5 = vshrl.u32 %v3232_v22, 4 }
 0x16d   : > { %vm1725_vm8 = vcmp.ne.s32.totalorder %v1720_v3, 0  ;;  %vm1728_vm4 = vcmp.lt.s32.totalorder %v1720_v3, 0 }
 0x16e   : > { %v1299_v8 = vsel %vm3685_vm1, %v1297_v2, 0  ;;  %v1698_v2 = vsub.s32 %v3215_v7, %v1697_v59  ;;  %v1708_v6 = vmul.u32 24, %v1707_v5 }
 0x16f   : > { %v1316_v12 = vshll.u32 %v1299_v8, 16  ;;  %v1320_v24 = vshrl.u32 %v1299_v8, 16  ;;  %v1461_v15 = vrot.slane %v1299_v8, 1  ;;  %v1619_v18 = vrot.slane %v1299_v8, 2 }
 0x170   : > { %vm1723_vm1 = vcmp.ne.s32.totalorder %v1698_v2, 0 }
 0x171   : > { %v1318_v21 = vrot.slane %v1316_v12, 1  ;;  %v1540_v25 = vrot.slane %v1320_v24, 1  ;;  %v1541_v39 = vrot.slane %v1316_v12, 2  ;;  %v1462_v26 = vsel %vm3686_vm7, %v1460_v4, %v1461_v15  ;;  %vm1731_vm7 = vmand %vm1728_vm4, %vm1725_vm8 }
 0x172   : > { %v1620_v29 = vsel %vm3687_vm9, %v1618_v20, %v1619_v18  ;;  %v1734_v12 = vadd.s32 24, %v1720_v3  ;;  %v1709_v20 = vsub.s32 %v3218_v11, %v1708_v6 }
 0x173   : > { %v1319_v31 = vsel %vm3688_vm0, %v1315_v9, %v1318_v21  ;;  %v1322_v32 = vor.u32 %v1320_v24, %v1318_v21  ;;  %v1542_v43 = vor.u32 %v1541_v39, %v1540_v25 }
 0x174   : > { %2872 = vmatprep.mubr.msk.bf16.mxu1 %vm1335_vm5, %v1319_v31  ;;  %v1737_v21 = vsel %vm1731_vm7, %v1734_v12, %v1720_v3  ;;  %vm1724_vm0 = vcmp.ne.s32.totalorder %v1709_v20, 0 }
 0x175   : > { %2873 = vmatmul.mubr.msk.bf16.vlgmr.msra.gmra.mrb[28].mxu1 %vm1335_vm5, %v1322_v32  ;;  %v1543_v27 = vsel %vm3689_vm2, %v1539_v36, %v1542_v43  ;;  %vm1727_vm2 = vcmp.lt.s32.totalorder %v1709_v20, 0  ;;  %vm1740_vm15 = vcmp.ge.s32.totalorder %v1737_v21, 4  ;;  %vm1743_vm14 = vcmp.lt.s32.totalorder %v1737_v21, 18 }
 0x176   : > { %2877 = vmatpush3.bf16.msra.mxu1 %v3224_v13  ;;  %2880 = vmatprep.mubr.msk.bf16.mxu1 %vm1335_vm5, %v3450_v35  ;;  %v3006_v13 = vld [vmem:[%s3659_s3 + $0x28] sm:$0xff]   ;;  %v3007_v35 = vld [vmem:[%s3659_s3 + $0x40] sm:$0xff]  }
 0x177   : > { %2896 = vmatprep.mubr.msk.bf16.mxu0 %vm1335_vm5, %v1543_v27  ;;  %2878 = vmatprep.subr.bf16.mxu1 %v3004_v44 }
 0x178   : > { %2897 = vmatmul.mubr.msk.bf16.vlgmr.msra.gmra.mrb[32].mxu0 %vm1335_vm5, %v1542_v43 }
 0x179   : > { %2916 = vmatprep.mubr.msk.bf16.mxu0 %vm3690_vm3, %v3037_v1  ;;  %2909 = vmatpush3.bf16.msra.mxu0 %v3011_v48 }
 0x17a   : > { %2879 = vmatpush3.bf16.msra.mxu1 %v3004_v44  ;;  %2910 = vmatprep.subr.bf16.mxu0 %v3037_v1  ;;  %v1733_v44 = vadd.s32 24, %v1709_v20 }
 0x17b   : > { %2884 = vmatprep.subr.bf16.mxu1 %v3005_v41 }
 0x17d   : > { %2881 = vmatmul.mubr.msk.bf16.vlgmr.msra.gmra.mrb[32].mxu1 %vm1335_vm5, %v1299_v8  ;;  %2911 = vmatpush3.bf16.msra.mxu0 %v3013_v50 }
 0x17e   : > { %2885 = vmatpush3.bf16.msra.mxu1 %v3005_v41  ;;  %2888 = vmatprep.mubr.msk.bf16.mxu1 %vm1335_vm5, %v1462_v26 }
 0x17f   : > { %2886 = vmatprep.subr.bf16.mxu1 %v3006_v13  ;;  %2912 = vmatprep.subr.bf16.mxu0 %v3037_v1 }
 0x181   : > { %2913 = vmatpush3.bf16.msra.mxu0 %v3015_v38 }
 0x182   : > { %2887 = vmatpush3.bf16.msra.mxu1 %v3006_v13  ;;  %2914 = vmatprep.subr.bf16.mxu0 %v3037_v1 }
 0x183   : > { %2900 = vmatprep.subr.bf16.mxu1 %v3007_v35 }
 0x185   : > { %2889 = vmatmul.mubr.msk.bf16.vlgmr.msra.gmra.mrb[36].mxu1 %vm1335_vm5, %v1461_v15  ;;  %2915 = vmatpush3.bf16.msra.mxu0 %v3017_v60 }
 0x186   : > { %2901 = vmatpush3.bf16.msra.mxu1 %v3007_v35  ;;  %2904 = vmatprep.mubr.msk.bf16.mxu1 %vm1335_vm5, %v1620_v29  ;;  %v2660_v29 = vld [vmem:[%s3660_s4] ss:$0 sm:$0xff] }
 0x187   : > { %2902 = vmatprep.subr.bf16.mxu1 %v3008_v30  ;;  %2932 = vmatprep.subr.bf16.mxu0 %v3037_v1 }
 0x18a   : > { %2903 = vmatpush3.bf16.msra.mxu1 %v3008_v30 }
 0x18b   : > { %2920 = vmatprep.subr.bf16.mxu1 %v3037_v1 }
 0x18d   : > { %2905 = vmatmul.mubr.msk.bf16.vlgmr.msra.gmra.mrb[40].mxu1 %vm1335_vm5, %v1619_v18  ;;  %vm1726_vm5 = vcmp.lt.s32.totalorder %v1698_v2, 0  ;;  %v1732_v18 = vadd.s32 24, %v1698_v2 }
 0x18e   : > { %2928 = vmatprep.mubr.msk.bf16.mxu1 %vm3690_vm3, %v3037_v1  ;;  %2921 = vmatpush3.bf16.msra.mxu1 %v3009_v45  ;;  %vm1729_vm9 = vmand %vm1726_vm5, %vm1723_vm1 }
 0x18f   : > { %2922 = vmatprep.subr.bf16.mxu1 %v3037_v1  ;;  %v1735_v39 = vsel %vm1729_vm9, %v1732_v18, %v1698_v2  ;;  %vm1730_vm1 = vmand %vm1727_vm2, %vm1724_vm0  ;;  %vm1835_vm9 = vcmask 517120   ;;  %vm3692_vm0 = vcmask 1046534   ;;  %vm3693_vm2 = vcmask 1047559  }
 0x190   : > { %vm1738_vm8 = vcmp.ge.s32.totalorder %v1735_v39, 4  ;;  %vm1741_vm4 = vcmp.lt.s32.totalorder %v1735_v39, 18  ;;  %vm1746_vm5 = vmand %vm1740_vm15, %vm1743_vm14 }
 0x191   : > { %vm1744_vm7 = vmand %vm1738_vm8, %vm1741_vm4  ;;  %vm2017_vm8 = vcmask 523264   ;;  %vm3694_vm4 = vcmask 1045504  }
 0x192   : > { %2923 = vmatpush3.bf16.msra.mxu1 %v3010_v47  ;;  %v1736_v47 = vsel %vm1730_vm1, %v1733_v44, %v1709_v20 }
 0x193   : > { %2924 = vmatprep.subr.bf16.mxu1 %v3037_v1  ;;  %vm1739_vm13 = vcmp.ge.s32.totalorder %v1736_v47, 4  ;;  %vm1742_vm14 = vcmp.lt.s32.totalorder %v1736_v47, 18 }
 0x194   : > { %vm1745_vm15 = vmand %vm1739_vm13, %vm1742_vm14  ;;  %vm3691_vm13 = vcmask 1045509  }
 0x196   : > { %2925 = vmatpush3.bf16.msra.mxu1 %v3012_v49 }
 0x197   : > { %2926 = vmatprep.subr.bf16.mxu1 %v3037_v1 }
 0x19a   : > { %2927 = vmatpush3.bf16.msra.mxu1 %v3014_v33 }
 0x19b   : > { %2944 = vmatprep.subr.bf16.mxu1 %v3037_v1 }
 0x248   : > { %v2874_v34 = vpop.f32.mrb[28].mxu1 }
 0x249   : > { %v1376_v42 = vpop.f32.mrb[29].mxu1 }
 0x24a   : > { %v2875_v19 = vpop.f32.mrb[30].mxu1 }
 0x24b   : > { %v2898_v51 = vpop.f32.mrb[32].mxu0  ;;  %v1379_v37 = vpop.f32.mrb[31].mxu1 }
 0x24c   : > { %v1596_v63 = vpop.f32.mrb[33].mxu0 }
 0x24d   : > { %v2899_v52 = vpop.f32.mrb[34].mxu0 }
 0x24e   : > { %v1599_v54 = vpop.f32.mrb[35].mxu0 }
 0x250   : > { %v2882_v55 = vpop.f32.mrb[32].mxu1 }
 0x251   : > { %v1449_v58 = vadd.f32 %v2882_v55, %v2874_v34  ;;  %v1440_v16 = vpop.f32.mrb[33].mxu1 }
 0x252   : > { %v1441_v61 = vadd.f32 %v1440_v16, %v1376_v42  ;;  %v2883_v23 = vpop.f32.mrb[34].mxu1 }
 0x253   : > { %v1443_v62 = vpop.f32.mrb[35].mxu1 }
 0x254   : > { %v1444_v0 = vadd.f32 %v1443_v62, %v1379_v37 }
 0x258   : > { %v2890_v46 = vpop.f32.mrb[36].mxu1 }
 0x259   : > { %v1531_v8 = vadd.f32 %v2890_v46, %v1449_v58  ;;  %v1515_v40 = vpop.f32.mrb[37].mxu1 }
 0x25a   : > { %v1529_v10 = vadd.f32 %v1515_v40, %v1441_v61  ;;  %v2891_v4 = vpop.f32.mrb[38].mxu1 }
 0x25b   : > { %v1518_v24 = vpop.f32.mrb[39].mxu1  ;;  %v1612_v15 = vadd.f32 %v2898_v51, %v1531_v8 }
 0x25c   : > { %v1530_v28 = vadd.f32 %v1518_v24, %v1444_v0  ;;  %v1610_v9 = vadd.f32 %v1596_v63, %v1529_v10 }
 0x25e   : > { %v1611_v25 = vadd.f32 %v1599_v54, %v1530_v28 }
 0x260   : > { %v2906_v26 = vpop.f32.mrb[40].mxu1 }
 0x261   : > { %v1689_v31 = vadd.f32 %v2906_v26, %v1612_v15  ;;  %v1673_v32 = vpop.f32.mrb[41].mxu1 }
 0x262   : > { %v1687_v36 = vadd.f32 %v1673_v32, %v1610_v9  ;;  %v2907_v43 = vpop.f32.mrb[42].mxu1 }
 0x263   : > { %v1756_v27 = vadd.f32 %v2660_v29, %v1689_v31  ;;  %v1676_v41 = vpop.f32.mrb[43].mxu1 }
 0x264   : > { %v1754_v13 = vadd.f32 %v2660_v29, %v1687_v36  ;;  %v1688_v35 = vadd.f32 %v1676_v41, %v1611_v25 }
 0x265   : > { %v1759_v30 = vmax.f32 %v1756_v27, 0.0 }
 0x266   : > { %v1757_v45 = vmax.f32 %v1754_v13, 0.0  ;;  %v1755_v51 = vadd.f32 %v2660_v29, %v1688_v35 }
 0x267   : > { %v1768_v48 = vsel %vm1746_vm5, %v1759_v30, 0.0 }
 0x268   : > { %v1806_v49 = vcombine.high %v1768_v48, %v1768_v48  ;;  %v1813_v50 = vrot.slane %v1768_v48, %v3307_v57  ;;  %v1766_v33 = vsel %vm1744_vm7, %v1757_v45, 0.0  ;;  %v1758_v46 = vmax.f32 %v1755_v51, 0.0 }
 0x269   : > { %v1772_v38 = vcombine.high %v1766_v33, %v1766_v33  ;;  %v1779_v60 = vrot.slane %v1766_v33, %v3307_v57 }
 0x26a   : > { %v1820_v34 = vrot.slane %v1806_v49, %v3307_v57  ;;  %v1821_v42 = vcombine.high %v1813_v50, %v1813_v50  ;;  %v1892_v19 = vsel %vm1835_vm9, %v1813_v50, -inf  ;;  %v1767_v21 = vsel %vm1745_vm15, %v1758_v46, 0.0 }
 0x26b   : > { %v1893_v37 = vrot.slane %v1892_v19, 4  ;;  %v1786_v63 = vrot.slane %v1772_v38, %v3307_v57  ;;  %v1787_v14 = vcombine.high %v1779_v60, %v1779_v60  ;;  %v1836_v52 = vsel %vm1835_vm9, %v1779_v60, -inf }
 0x26c   : > { %v1822_v53 = vcombine.high %v1820_v34, %v1820_v34  ;;  %v1899_v54 = vsel %vm1835_vm9, %v1821_v42, -inf  ;;  %v1906_v55 = vsel %vm1835_vm9, %v1820_v34, -inf  ;;  %v1837_v56 = vrot.slane %v1836_v52, 4 }
 0x26d   : > { %v1900_v58 = vrot.slane %v1899_v54, 4  ;;  %v1907_v16 = vrot.slane %v1906_v55, 4  ;;  %v1788_v59 = vcombine.high %v1786_v63, %v1786_v63  ;;  %v1843_v62 = vsel %vm1835_vm9, %v1787_v14, -inf }
 0x26e   : > { %v1913_v61 = vsel %vm1835_vm9, %v1822_v53, -inf  ;;  %v1838_v23 = vmax.f32 %v1836_v52, %v1837_v56  ;;  %v1850_v0 = vsel %vm1835_vm9, %v1786_v63, -inf  ;;  %v1894_v3 = vmax.f32 %v1892_v19, %v1893_v37 }
 0x26f   : > { %v1901_v5 = vmax.f32 %v1899_v54, %v1900_v58  ;;  %v1914_v2 = vrot.slane %v1913_v61, 4  ;;  %v1844_v8 = vrot.slane %v1843_v62, 4  ;;  %v1851_v40 = vrot.slane %v1850_v0, 4 }
 0x270   : > { %v1839_v6 = vrot.slane %v1838_v23, 2  ;;  %v1857_v10 = vsel %vm1835_vm9, %v1788_v59, -inf  ;;  %v1908_v12 = vmax.f32 %v1906_v55, %v1907_v16  ;;  %v1895_v9 = vrot.slane %v1894_v3, 2 }
 0x271   : > { %v1902_v4 = vrot.slane %v1901_v5, 2  ;;  %v1845_v15 = vmax.f32 %v1843_v62, %v1844_v8  ;;  %v1852_v18 = vmax.f32 %v1850_v0, %v1851_v40  ;;  %v1858_v28 = vrot.slane %v1857_v10, 4 }
 0x272   : > { %v1840_v24 = vmax.f32 %v1838_v23, %v1839_v6  ;;  %v1915_v20 = vmax.f32 %v1913_v61, %v1914_v2  ;;  %v1909_v31 = vrot.slane %v1908_v12, 2  ;;  %v1896_v27 = vmax.f32 %v1894_v3, %v1895_v9 }
 0x273   : > { %v1846_v39 = vrot.slane %v1845_v15, 2  ;;  %v1853_v26 = vrot.slane %v1852_v18, 2  ;;  %v1859_v29 = vmax.f32 %v1857_v10, %v1858_v28  ;;  %v1903_v32 = vmax.f32 %v1901_v5, %v1902_v4 }
 0x274   : > { %v1841_v25 = vrot.slane %v1840_v24, 1  ;;  %v1916_v41 = vrot.slane %v1915_v20, 2  ;;  %v1789_v13 = vcombine.high %v1767_v21, %v1767_v21  ;;  %v1910_v48 = vmax.f32 %v1908_v12, %v1909_v31 }
 0x275   : > { %v1847_v36 = vmax.f32 %v1845_v15, %v1846_v39  ;;  %v1854_v43 = vmax.f32 %v1852_v18, %v1853_v26  ;;  %v1860_v44 = vrot.slane %v1859_v29, 2  ;;  %v1796_v49 = vrot.slane %v1767_v21, %v3307_v57 }
 0x276   : > { %v1842_v35 = vmax.f32 %v1840_v24, %v1841_v25  ;;  %v1904_v50 = vrot.slane %v1903_v32, 1  ;;  %v1897_v34 = vrot.slane %v1896_v27, 1  ;;  %v1803_v42 = vrot.slane %v1789_v13, %v3307_v57 }
 0x277   : > { %v1848_v30 = vrot.slane %v1847_v36, 1  ;;  %v1855_v45 = vrot.slane %v1854_v43, 1  ;;  %v1861_v47 = vmax.f32 %v1859_v29, %v1860_v44  ;;  %v1804_v19 = vcombine.high %v1796_v49, %v1796_v49 }
 0x278   : > { %v1864_v51 = vsel %vm1835_vm9, %v1796_v49, -inf  ;;  %v1917_v37 = vmax.f32 %v1915_v20, %v1916_v41  ;;  %v1920_v63 = vpack.c.bf16 %v1842_v35, %v1842_v35  ;;  %v1805_v54 = vcombine.high %v1803_v42, %v1803_v42 }
 0x279   : > { %v1849_v33 = vmax.f32 %v1847_v36, %v1848_v30  ;;  %v1856_v38 = vmax.f32 %v1854_v43, %v1855_v45  ;;  %v1862_v60 = vrot.slane %v1861_v47, 1  ;;  %v1865_v52 = vrot.slane %v1864_v51, 4 }
 0x27a   : > { %v1871_v55 = vsel %vm1835_vm9, %v1804_v19, -inf  ;;  %v1878_v56 = vsel %vm1835_vm9, %v1803_v42, -inf  ;;  %v1905_v58 = vmax.f32 %v1903_v32, %v1904_v50  ;;  %v1911_v16 = vrot.slane %v1910_v48, 1 }
 0x27b   : > { %v1921_v14 = vpack.c.bf16 %v1849_v33, %v1849_v33  ;;  %v1863_v53 = vmax.f32 %v1861_v47, %v1862_v60  ;;  %v1922_v59 = vpack.c.bf16 %v1856_v38, %v1856_v38  ;;  %v1866_v61 = vmax.f32 %v1864_v51, %v1865_v52 }
 0x27c   : > { %v1872_v62 = vrot.slane %v1871_v55, 4  ;;  %v1879_v0 = vrot.slane %v1878_v56, 4  ;;  %v1885_v3 = vsel %vm1835_vm9, %v1805_v54, -inf  ;;  %v1898_v5 = vmax.f32 %v1896_v27, %v1897_v34 }
 0x27d   : > { %v1945_v23 = vunpack.c.l.b16 %v1921_v14  ;;  %v1944_v2 = vunpack.c.l.b16 %v1920_v63  ;;  %v1867_v46 = vrot.slane %v1866_v61, 2  ;;  %v1886_v6 = vrot.slane %v1885_v3, 4 }
 0x27e   : > { %v1923_v8 = vpack.c.bf16 %v1863_v53, %v1863_v53  ;;  %v1873_v40 = vmax.f32 %v1871_v55, %v1872_v62  ;;  %v1880_v10 = vmax.f32 %v1878_v56, %v1879_v0  ;;  %v1918_v4 = vrot.slane %v1917_v37, 1  ;;  %v3016_v62 = vld [vmem:[%s3661_s5 + $0x60] sm:$0xff]  }
 0x27f   : > { %v1912_v12 = vmax.f32 %v1910_v48, %v1911_v16  ;;  %v1946_v24 = vunpack.c.l.b16 %v1922_v59  ;;  %v1868_v15 = vmax.f32 %v1866_v61, %v1867_v46  ;;  %v1887_v18 = vmax.f32 %v1885_v3, %v1886_v6  ;;  %v3019_v6 = vld [vmem:[%s3661_s5 + $0x40] sm:$0xff]  }
 0x280   : > { %v1929_v28 = vpack.c.bf16 %v1905_v58, %v1905_v58  ;;  %v1956_v9 = vsel %vm1268_vm6, %v1945_v23, %v1944_v2  ;;  %v1874_v20 = vrot.slane %v1873_v40, 2  ;;  %v1881_v21 = vrot.slane %v1880_v10, 2 }
 0x281   : > { %v1928_v25 = vpack.c.bf16 %v1898_v5, %v1898_v5  ;;  %v1869_v39 = vrot.slane %v1868_v15, 1  ;;  %v1888_v26 = vrot.slane %v1887_v18, 2  ;;  %v1947_v29 = vunpack.c.l.b16 %v1923_v8  ;;  %v3018_v5 = vld [vmem:[%s3661_s5 + $0x68] sm:$0xff]  }
 0x282   : > { %v1875_v31 = vmax.f32 %v1873_v40, %v1874_v20  ;;  %v1882_v32 = vmax.f32 %v1880_v10, %v1881_v21  ;;  %v1919_v36 = vmax.f32 %v1917_v37, %v1918_v4  ;;  %v1930_v43 = vpack.c.bf16 %v1912_v12, %v1912_v12  ;;  %v3020_v40 = vld [vmem:[%s3661_s5 + $0x70] sm:$0xff]   ;;  %v3021_v10 = vld [vmem:[%s3661_s5 + $0x48] sm:$0xff]   ;;  %v3022_v4 = vld [vmem:[%s3661_s5 + $0x78] sm:$0xff]  }
 0x283   : > { %v1870_v44 = vmax.f32 %v1868_v15, %v1869_v39  ;;  %v1889_v27 = vmax.f32 %v1887_v18, %v1888_v26  ;;  %v1957_v41 = vsel %vm1270_vm10, %v1946_v24, %v1956_v9  ;;  %v1953_v13 = vunpack.c.l.b16 %v1929_v28  ;;  %v3023_v15 = vld [vmem:[%s3661_s5 + $0x50] sm:$0xff]   ;;  %v3024_v28 = vld [vmem:[%s3661_s5 + $0x58] sm:$0xff]   ;;  %v3025_v9 = vld [vmem:[%s3661_s5 + $0x80] sm:$0xff]  }
 0x284   : > { %v1876_v35 = vrot.slane %v1875_v31, 1  ;;  %v1883_v30 = vrot.slane %v1882_v32, 1  ;;  %v1952_v45 = vunpack.c.l.b16 %v1928_v25  ;;  %v1931_v33 = vpack.c.bf16 %v1919_v36, %v1919_v36  ;;  %v3026_v21 = vld [vmem:[%s3661_s5 + $0x88] sm:$0xff]   ;;  %v3027_v25 = vld [vmem:[%s3661_s5 + $0x90] sm:$0xff]   ;;  %v3028_v39 = vld [vmem:[%s3661_s5 + $0x98] sm:$0xff]  }
 0x285   : > { %v1924_v47 = vpack.c.bf16 %v1870_v44, %v1870_v44  ;;  %v1890_v48 = vrot.slane %v1889_v27, 1  ;;  %v1958_v38 = vsel %vm1272_vm11, %v1947_v29, %v1957_v41  ;;  %v1954_v42 = vunpack.c.l.b16 %v1930_v43 }
 0x286   : > { %v1877_v49 = vmax.f32 %v1875_v31, %v1876_v35  ;;  %v1884_v50 = vmax.f32 %v1882_v32, %v1883_v30  ;;  %v1963_v37 = vsel %vm1268_vm6, %v1953_v13, %v1952_v45  ;;  %v1955_v53 = vunpack.c.l.b16 %v1931_v33 }
 0x287   : > { %v1948_v60 = vunpack.c.l.b16 %v1924_v47  ;;  %v1891_v34 = vmax.f32 %v1889_v27, %v1890_v48  ;;  %v1964_v55 = vsel %vm1270_vm10, %v1954_v42, %v1963_v37  ;;  %v2378_v48 = vshrl.u32 %v3228_v17, 3 }
 0x288   : > { %v1925_v19 = vpack.c.bf16 %v1877_v49, %v1877_v49  ;;  %v1926_v51 = vpack.c.bf16 %v1884_v50, %v1884_v50  ;;  %v1965_v61 = vsel %vm1272_vm11, %v1955_v53, %v1964_v55  ;;  %v2389_v49 = vshrl.u32 %v3232_v22, 3  ;;  %v2718_v55 = vld [vmem:[%s3662_s6] ss:$0 sm:$0xff] }
 0x289   : > { %v1927_v63 = vpack.c.bf16 %v1891_v34, %v1891_v34  ;;  %v1959_v14 = vsel %vm1274_vm12, %v1948_v60, %v1958_v38  ;;  %v2379_v33 = vmul.u32 12, %v2378_v48 }
 0x28a   : > { %v1949_v52 = vunpack.c.l.b16 %v1925_v19  ;;  %v1950_v54 = vunpack.c.l.b16 %v1926_v51  ;;  %v2390_v42 = vmul.u32 12, %v2389_v49 }
 0x28b   : > { %v1951_v56 = vunpack.c.l.b16 %v1927_v63  ;;  %v2380_v63 = vsub.s32 %v3215_v7, %v2379_v33 }
 0x28c   : > { %v1960_v58 = vsel %vm3691_vm13, %v1949_v52, %v1959_v14  ;;  %v2391_v52 = vsub.s32 %v3218_v11, %v2390_v42 }
 0x28d   : > { %v1961_v16 = vsel %vm3692_vm0, %v1950_v54, %v1960_v58  ;;  %vm2396_vm1 = vcmp.lt.s32.totalorder %v2380_v63, 0  ;;  %v2400_v17 = vadd.s32 12, %v2380_v63 }
 0x28e   : > { %v1962_v59 = vsel %vm3693_vm2, %v1951_v56, %v1961_v16  ;;  %vm2395_vm5 = vcmp.ne.s32.totalorder %v2391_v52, 0  ;;  %vm2397_vm7 = vcmp.lt.s32.totalorder %v2391_v52, 0  ;;  %v2401_v22 = vadd.s32 12, %v2391_v52 }
 0x28f   : > { %v1966_v23 = vpack.c.b16 %v1965_v61, %v1962_v59  ;;  %vm2399_vm14 = vmand %vm2397_vm7, %vm2395_vm5 }
 0x290   : > { %v2403_v56 = vsel %vm2399_vm14, %v2401_v22, %v2391_v52 }
 0x291   : > { %v1969_v0 = vsel %vm3694_vm4, %v1966_v23, 0  ;;  %vm2405_vm0 = vcmp.ge.s32.totalorder %v2403_v56, 0  ;;  %vm2407_vm2 = vcmp.lt.s32.totalorder %v2403_v56, 6 }
 0x292   : > { %v1989_v3 = vshll.u32 %v1969_v0, 16  ;;  %2929 = vmatmul.mubr.msk.bf16.vlgmr.msra.gmra.mrb[44].mxu1 %vm2017_vm8, %v1969_v0  ;;  %v1987_v2 = vshrl.u32 %v1969_v0, 16  ;;  %v2139_v20 = vrot.slane %v1969_v0, 1  ;;  %v2301_v26 = vrot.slane %v1969_v0, 2  ;;  %vm2409_vm4 = vmand %vm2405_vm0, %vm2407_vm2 }
 0x293   : > { %2945 = vmatpush3.bf16.msra.mxu1 %v3016_v62  ;;  %2952 = vmatprep.mubr.msk.bf16.mxu1 %vm3690_vm3, %v3037_v1 }
 0x294   : > { %2946 = vmatprep.subr.bf16.mxu1 %v3037_v1  ;;  %v1991_v46 = vrot.slane %v1989_v3, 1  ;;  %v2219_v12 = vrot.slane %v1987_v2, 1  ;;  %v2220_v24 = vrot.slane %v1989_v3, 2 }
 0x296   : > { %v1992_v8 = vor.u32 %v1991_v46, %v1987_v2  ;;  %v2221_v18 = vor.u32 %v2220_v24, %v2219_v12 }
 0x297   : > { %2947 = vmatpush3.bf16.msra.mxu1 %v3018_v5 }
 0x298   : > { %2917 = vmatmul.mubr.msk.bf16.vlgmr.msra.gmra.mrb[36].mxu0 %vm2017_vm8, %v1992_v8  ;;  %2948 = vmatprep.subr.bf16.mxu1 %v3037_v1 }
 0x299   : > { %2933 = vmatpush3.bf16.msra.mxu0 %v3019_v6  ;;  %2940 = vmatprep.mubr.msk.bf16.mxu0 %vm3690_vm3, %v3037_v1 }
 0x29a   : > { %2934 = vmatprep.subr.bf16.mxu0 %v3037_v1 }
 0x29b   : > { %2949 = vmatpush3.bf16.msra.mxu1 %v3020_v40 }
 0x29c   : > { %2950 = vmatprep.subr.bf16.mxu1 %v3037_v1 }
 0x29d   : > { %2935 = vmatpush3.bf16.msra.mxu0 %v3021_v10 }
 0x29e   : > { %2936 = vmatprep.subr.bf16.mxu0 %v3037_v1 }
 0x29f   : > { %2951 = vmatpush3.bf16.msra.mxu1 %v3022_v4 }
 0x2a1   : > { %2937 = vmatpush3.bf16.msra.mxu0 %v3023_v15 }
 0x2a2   : > { %2953 = vmatmul.mubr.msk.bf16.vlgmr.msra.gmra.mrb[48].mxu1 %vm2017_vm8, %v2221_v18  ;;  %2938 = vmatprep.subr.bf16.mxu0 %v3037_v1 }
 0x2a5   : > { %2939 = vmatpush3.bf16.msra.mxu0 %v3024_v28 }
 0x2a6   : > { %2956 = vmatprep.subr.bf16.mxu0 %v3037_v1 }
 0x2a8   : > { %2941 = vmatmul.mubr.msk.bf16.vlgmr.msra.gmra.mrb[40].mxu0 %vm2017_vm8, %v2139_v20 }
 0x2a9   : > { %2957 = vmatpush3.bf16.msra.mxu0 %v3025_v9  ;;  %2964 = vmatprep.mubr.msk.bf16.mxu0 %vm3690_vm3, %v3037_v1  ;;  %vm2394_vm3 = vcmp.ne.s32.totalorder %v2380_v63, 0 }
 0x2aa   : > { %2958 = vmatprep.subr.bf16.mxu0 %v3037_v1  ;;  %vm2398_vm9 = vmand %vm2396_vm1, %vm2394_vm3  ;;  %vm2460_vm3 = vcmask 1041408   ;;  %vm3695_vm1 = vcmask 1045509  }
 0x2ab   : > { %v2402_v53 = vsel %vm2398_vm9, %v2400_v17, %v2380_v63 }
 0x2ac   : > { %vm2404_vm15 = vcmp.ge.s32.totalorder %v2402_v53, 0  ;;  %vm2406_vm13 = vcmp.lt.s32.totalorder %v2402_v53, 6 }
 0x2ad   : > { %2959 = vmatpush3.bf16.msra.mxu0 %v3026_v21 }
 0x2ae   : > { %2960 = vmatprep.subr.bf16.mxu0 %v3037_v1 }
 0x2b1   : > { %2961 = vmatpush3.bf16.msra.mxu0 %v3027_v25 }
 0x2b2   : > { %2962 = vmatprep.subr.bf16.mxu0 %v3037_v1 }
 0x2b5   : > { %2963 = vmatpush3.bf16.msra.mxu0 %v3028_v39 }
 0x2b8   : > { %2965 = vmatmul.mubr.msk.bf16.vlgmr.msra.gmra.mrb[44].mxu0 %vm2017_vm8, %v2301_v26  ;;  %vm2408_vm8 = vmand %vm2404_vm15, %vm2406_vm13 }
 0x365   : > { %v2122_v29 = vpop.f32.mrb[44].mxu1 }
 0x366   : > { %v2930_v31 = vpop.f32.mrb[45].mxu1 }
 0x367   : > { %v2125_v32 = vpop.f32.mrb[46].mxu1 }
 0x368   : > { %v2931_v36 = vpop.f32.mrb[47].mxu1 }
 0x36b   : > { %v2055_v43 = vpop.f32.mrb[36].mxu0 }
 0x36c   : > { %v2123_v44 = vadd.f32 %v2122_v29, %v2055_v43  ;;  %v2918_v27 = vpop.f32.mrb[37].mxu0 }
 0x36d   : > { %v2058_v41 = vpop.f32.mrb[38].mxu0 }
 0x36e   : > { %v2126_v13 = vadd.f32 %v2125_v32, %v2058_v41  ;;  %v2919_v35 = vpop.f32.mrb[39].mxu0 }
 0x375   : > { %v2283_v30 = vpop.f32.mrb[48].mxu1 }
 0x376   : > { %v2954_v45 = vpop.f32.mrb[49].mxu1 }
 0x377   : > { %v2286_v47 = vpop.f32.mrb[50].mxu1 }
 0x378   : > { %v2955_v1 = vpop.f32.mrb[51].mxu1 }
 0x37b   : > { %v2201_v50 = vpop.f32.mrb[40].mxu0 }
 0x37c   : > { %v2208_v38 = vadd.f32 %v2201_v50, %v2123_v44  ;;  %v2942_v60 = vpop.f32.mrb[41].mxu0 }
 0x37d   : > { %v2204_v34 = vpop.f32.mrb[42].mxu0 }
 0x37e   : > { %v2209_v19 = vadd.f32 %v2204_v34, %v2126_v13  ;;  %v2943_v51 = vpop.f32.mrb[43].mxu0  ;;  %v2290_v37 = vadd.f32 %v2283_v30, %v2208_v38 }
 0x380   : > { %v2291_v14 = vadd.f32 %v2286_v47, %v2209_v19 }
 0x38b   : > { %v2363_v54 = vpop.f32.mrb[44].mxu0 }
 0x38c   : > { %v2370_v58 = vadd.f32 %v2363_v54, %v2290_v37  ;;  %v2966_v7 = vpop.f32.mrb[45].mxu0 }
 0x38d   : > { %v2366_v11 = vpop.f32.mrb[46].mxu0 }
 0x38e   : > { %v2417_v16 = vadd.f32 %v2718_v55, %v2370_v58  ;;  %v2371_v59 = vadd.f32 %v2366_v11, %v2291_v14  ;;  %v2967_v61 = vpop.f32.mrb[47].mxu0 }
 0x390   : > { %v2419_v23 = vmax.f32 %v2417_v16, 0.0  ;;  %v2418_v62 = vadd.f32 %v2718_v55, %v2371_v59 }
 0x392   : > { %v2425_v0 = vsel %vm2408_vm8, %v2419_v23, 0.0  ;;  %v2420_v3 = vmax.f32 %v2418_v62, 0.0 }
 0x393   : > { %v2429_v5 = vcombine.high %v2425_v0, %v2425_v0  ;;  %v2436_v2 = vrot.slane %v2425_v0, %v3307_v57 }
 0x394   : > { %v2426_v46 = vsel %vm2409_vm4, %v2420_v3, 0.0 }
 0x395   : > { %v2443_v6 = vrot.slane %v2429_v5, %v3307_v57  ;;  %v2444_v8 = vcombine.high %v2436_v2, %v2436_v2  ;;  %v2461_v40 = vsel %vm2460_vm3, %v2436_v2, -inf  ;;  %v2452_v10 = vrot.slane %v2426_v46, %v3307_v57 }
 0x396   : > { %v2462_v4 = vrot.slane %v2461_v40, 4 }
 0x397   : > { %v2445_v12 = vcombine.high %v2443_v6, %v2443_v6  ;;  %v2468_v24 = vsel %vm2460_vm3, %v2444_v8, -inf  ;;  %v2475_v15 = vsel %vm2460_vm3, %v2443_v6, -inf  ;;  %v2453_v18 = vcombine.high %v2452_v10, %v2452_v10 }
 0x398   : > { %v2463_v28 = vmax.f32 %v2461_v40, %v2462_v4  ;;  %v2469_v9 = vrot.slane %v2468_v24, 4  ;;  %v2476_v20 = vrot.slane %v2475_v15, 4  ;;  %v2489_v21 = vsel %vm2460_vm3, %v2452_v10, -inf }
 0x399   : > { %v2482_v25 = vsel %vm2460_vm3, %v2445_v12, -inf  ;;  %v2490_v39 = vrot.slane %v2489_v21, 4  ;;  %v2496_v26 = vsel %vm2460_vm3, %v2453_v18, -inf }
 0x39a   : > { %v2464_v29 = vrot.slane %v2463_v28, 2  ;;  %v2470_v31 = vmax.f32 %v2468_v24, %v2469_v9  ;;  %v2477_v57 = vmax.f32 %v2475_v15, %v2476_v20  ;;  %v2483_v32 = vrot.slane %v2482_v25, 4 }
 0x39b   : > { %v2491_v36 = vmax.f32 %v2489_v21, %v2490_v39  ;;  %v2497_v43 = vrot.slane %v2496_v26, 4 }
 0x39c   : > { %v2465_v44 = vmax.f32 %v2463_v28, %v2464_v29  ;;  %v2471_v27 = vrot.slane %v2470_v31, 2  ;;  %v2478_v41 = vrot.slane %v2477_v57, 2  ;;  %v2484_v13 = vmax.f32 %v2482_v25, %v2483_v32 }
 0x39d   : > { %v2492_v35 = vrot.slane %v2491_v36, 2  ;;  %v2498_v30 = vmax.f32 %v2496_v26, %v2497_v43 }
 0x39e   : > { %v2466_v45 = vrot.slane %v2465_v44, 1  ;;  %v2472_v47 = vmax.f32 %v2470_v31, %v2471_v27  ;;  %v2479_v48 = vmax.f32 %v2477_v57, %v2478_v41  ;;  %v2485_v1 = vrot.slane %v2484_v13, 2 }
 0x39f   : > { %v2493_v49 = vmax.f32 %v2491_v36, %v2492_v35  ;;  %v2499_v50 = vrot.slane %v2498_v30, 2 }
 0x3a0   : > { %v2467_v33 = vmax.f32 %v2465_v44, %v2466_v45  ;;  %v2473_v38 = vrot.slane %v2472_v47, 1  ;;  %v2480_v60 = vrot.slane %v2479_v48, 1  ;;  %v2486_v34 = vmax.f32 %v2484_v13, %v2485_v1 }
 0x3a1   : > { %v2494_v42 = vrot.slane %v2493_v49, 1  ;;  %v2500_v19 = vmax.f32 %v2498_v30, %v2499_v50 }
 0x3a2   : > { %v2474_v51 = vmax.f32 %v2472_v47, %v2473_v38  ;;  %v2481_v37 = vmax.f32 %v2479_v48, %v2480_v60  ;;  %v2487_v63 = vrot.slane %v2486_v34, 1  ;;  %v2727_v14 = vpack.c.bf16 %v2467_v33, %v2467_v33 }
 0x3a3   : > { %v2495_v52 = vmax.f32 %v2493_v49, %v2494_v42  ;;  %v2501_v17 = vrot.slane %v2500_v19, 1 }
 0x3a4   : > { %v2488_v22 = vmax.f32 %v2486_v34, %v2487_v63  ;;  %v2728_v53 = vpack.c.bf16 %v2474_v51, %v2474_v51  ;;  %v2729_v54 = vpack.c.bf16 %v2481_v37, %v2481_v37  ;;  %v2527_v7 = vunpack.c.l.b16 %v2727_v14 }
 0x3a5   : > { %v2502_v55 = vmax.f32 %v2500_v19, %v2501_v17  ;;  %v2731_v56 = vpack.c.bf16 %v2495_v52, %v2495_v52 }
 0x3a6   : > { %v2730_v58 = vpack.c.bf16 %v2488_v22, %v2488_v22  ;;  %v2528_v11 = vunpack.c.l.b16 %v2728_v53  ;;  %v2529_v16 = vunpack.c.l.b16 %v2729_v54 }
 0x3a7   : > { %v2732_v59 = vpack.c.bf16 %v2502_v55, %v2502_v55  ;;  %v2531_v0 = vunpack.c.l.b16 %v2731_v56 }
 0x3a8   : > { %v2530_v61 = vunpack.c.l.b16 %v2730_v58  ;;  %v2533_v23 = vsel %vm1268_vm6, %v2528_v11, %v2527_v7 }
 0x3a9   : > { %v2534_v62 = vsel %vm1270_vm10, %v2529_v16, %v2533_v23  ;;  %v2532_v3 = vunpack.c.l.b16 %v2732_v59 }
 0x3aa   : > { %v2535_v5 = vsel %vm1272_vm11, %v2530_v61, %v2534_v62 }
 0x3ab   : > { %v2536_v2 = vsel %vm1274_vm12, %v2531_v0, %v2535_v5 }
 0x3ac   : > { %v2537_v46 = vsel %vm3695_vm1, %v2532_v3, %v2536_v2 }
 0x3ad   : > { %v2538_v6 = vpack.c.b16 %v2537_v46, %v2537_v46 }
 0x3af   : > { %2540 = vst [vmem:[%s276_s23] sm:$0x7] %v2538_v6 }
 0x3b0 PF: > { %s17_s24 = sadd.s32 1, %s3035_s24  }
 0x3b1   : > { %p14_p4 = scmp.ge.s32.totalorder %s17_s24, 4  }
 0x3b3   :  { %16 = sbr.rel (!%p14_p4) target bundleno = 1 (0x1), region = 90 }

// kernel: eeg_1d_cnn_forward.3
= control target key start
LH: loop header
LB: loop body
LE: loop exit
PB: predicated region body
PF: predicated region fallthrough
CT: control target
= control target key end

     0   :  { %10 = vsyncpa [#allocation4], 0  ;;  %s2048_s18 = smov 0   ;;  %s2050_s19 = smov 0   ;;  %s2346_s0 = inlined_call_operand.vmem [shape: bf16[2,768], index: 0, kind: input, shape index: {}]   ;;  %s2347_s1 = inlined_call_operand.vmem [shape: bf16[768,512], index: 1, kind: input, shape index: {}]   ;;  %s2348_s2 = inlined_call_operand.vmem [shape: f32[1,512], index: 2, kind: input, shape index: {}]   ;;  %s2349_s3 = inlined_call_operand.vmem [shape: bf16[512,10], index: 3, kind: input, shape index: {}]   ;;  %s2350_s4 = inlined_call_operand.vmem [shape: f32[1,10], index: 4, kind: input, shape index: {}]   ;;  %s2351_s5 = inlined_call_operand.hbm [shape: f32[2,10], index: 5, kind: output, shape index: {}]  }
   0x1   :  { %s2052_s20 = smov 0  }
   0x2 LB: > { %s1553_s21 = sadd.s32 4294967295, %s2011_s20   ;;  %s25_s22 = sadd.s32 1, %s2007_s19  ;;  %s2011_s20 = sphi %s2052_s20, %s16_s20   ;;  %s2007_s19 = sphi %s2050_s19, %s2354_s19   ;;  %s2003_s18 = sphi %s2048_s18, %s2353_s18  }
   0x3   : > { %p26_p0 = scmp.ge.s32.totalorder %s25_s22, 2  ;;  %p1556_p1 = scmp.ge.s32.totalorder %s2011_s20, 1 }
   0x4   : > { %p218_p2 = scmp.lt.s32.totalorder %s2011_s20, 3 }
   0x5   : > { %s2356_s22 = smov (%p26_p0, %s25_s22), 0 }
   0x6   : > { %p219_p3 = pnand %p1556_p1, %p218_p2 }
   0x7   : > { %s250_s23 = smul.u32 (!%p219_p3), 3, %s2003_s18  ;;  %p1559_p6 = scmp.ne.s32.totalorder (!%p219_p3), %s2003_s18, 0 }
   0x8   : > { %222 = sbr.rel (%p219_p3) target bundleno = 606 (0x25e), region = 40 }
   0x9   : > { %s259_s24 = smul.u32 (!%p219_p3), 48, %s2003_s18  ;;  %p253_p4 = scmp.lt.s32.totalorder (!%p219_p3), %s250_s23, 5 }
   0xb   : > { %p260_p5 = scmp.lt.s32.totalorder (!%p219_p3), %s259_s24, 95 }
   0xf   : > { %s2358_s23 = smov (!%p253_p4, %s250_s23), 5  ;;  %s2360_s24 = smov (!%p260_p5, %s259_s24), 95 }
  0x10   : > { %s257_s27 = scalar_lea.vmem %s2346_s0, %s2358_s23  ;;  %s1695_s28 = sshll.u32 %s2360_s24, 4  ;;  %v2013_v0 = vmov (!%p1559_p6), 0.0  }
  0x11   : > { %s2080_s6 = scalar_lea.vmem %s2347_s1, %s1695_s28  ;;  %270 = sbr.rel (%p1559_p6) target bundleno = 24 (0x18), region = 44  ;;  %271 = vst [vmem:[#allocation2] sm:$0xff] (!%p1559_p6), %v2013_v0 }
  0x18 PF: > { %v1783_v1 = vld [vmem:[%s2080_s6 + $0x4] ss:$16 sps:$4 sm:$0xff]   ;;  %v1785_v2 = vld [vmem:[%s2080_s6 + $0xc] ss:$16 sps:$4 sm:$0xff]   ;;  %v1787_v3 = vld [vmem:[%s2080_s6] ss:$16 sps:$4 sm:$0xff]   ;;  %v382_v41 = vlaneseq }
  0x19   : > { %877 = vmatprep.subr.bf16.mxu0 %v1783_v1  ;;  %v1788_v4 = vld [vmem:[%s2080_s6 + $0x8] ss:$16 sps:$4 sm:$0xff]   ;;  %959 = vmatprep.subr.bf16.mxu1 %v1785_v2  ;;  %v1789_v5 = vld [vmem:[%s2080_s6 + $0x24] ss:$16 sps:$4 sm:$0xff]   ;;  %v1791_v6 = vld [vmem:[%s2080_s6 + $0x2c] ss:$16 sps:$4 sm:$0xff]  }
  0x1a   : > { %878 = vmatpush1.bf16.msra.mxu0 %v1787_v3  ;;  %960 = vmatpush1.bf16.msra.mxu1 %v1788_v4  ;;  %v1793_v7 = vld [vmem:[%s2080_s6 + $0x20] ss:$16 sps:$4 sm:$0xff]   ;;  %v1794_v8 = vld [vmem:[%s2080_s6 + $0x28] ss:$16 sps:$4 sm:$0xff]   ;;  %v1795_v9 = vld [vmem:[%s2080_s6 + $0x44] ss:$16 sps:$4 sm:$0xff]  }
  0x1b   : > { %879 = vmatprep.subr.bf16.mxu0 %v1789_v5  ;;  %961 = vmatprep.subr.bf16.mxu1 %v1791_v6  ;;  %v1797_v10 = vld [vmem:[%s2080_s6 + $0x4c] ss:$16 sps:$4 sm:$0xff]   ;;  %v1799_v11 = vld [vmem:[%s2080_s6 + $0x40] ss:$16 sps:$4 sm:$0xff]   ;;  %v1800_v12 = vld [vmem:[%s2080_s6 + $0x48] ss:$16 sps:$4 sm:$0xff]  }
  0x1c   : > { %v1801_v13 = vld [vmem:[%s2080_s6 + $0x64] ss:$16 sps:$4 sm:$0xff]   ;;  %v1803_v14 = vld [vmem:[%s2080_s6 + $0x6c] ss:$16 sps:$4 sm:$0xff]   ;;  %v1805_v15 = vld [vmem:[%s2080_s6 + $0x60] ss:$16 sps:$4 sm:$0xff]  }
  0x1d   : > { %v1806_v16 = vld [vmem:[%s2080_s6 + $0x68] ss:$16 sps:$4 sm:$0xff]   ;;  %v1807_v17 = vld [vmem:[%s2080_s6 + $0x84] ss:$16 sps:$4 sm:$0xff]   ;;  %v1809_v18 = vld [vmem:[%s2080_s6 + $0x8c] ss:$16 sps:$4 sm:$0xff]  }
  0x1e   : > { %880 = vmatpush1.bf16.msra.mxu0 %v1793_v7  ;;  %962 = vmatpush1.bf16.msra.mxu1 %v1794_v8  ;;  %v1811_v19 = vld [vmem:[%s2080_s6 + $0x80] ss:$16 sps:$4 sm:$0xff]   ;;  %v1812_v20 = vld [vmem:[%s2080_s6 + $0x88] ss:$16 sps:$4 sm:$0xff]   ;;  %v1813_v21 = vld [vmem:[%s2080_s6 + $0xa4] ss:$16 sps:$4 sm:$0xff]  }
  0x1f   : > { %881 = vmatprep.subr.bf16.mxu0 %v1795_v9  ;;  %963 = vmatprep.subr.bf16.mxu1 %v1797_v10  ;;  %v1815_v22 = vld [vmem:[%s2080_s6 + $0xac] ss:$16 sps:$4 sm:$0xff]   ;;  %v1817_v23 = vld [vmem:[%s2080_s6 + $0xa0] ss:$16 sps:$4 sm:$0xff]   ;;  %v1818_v24 = vld [vmem:[%s2080_s6 + $0xa8] ss:$16 sps:$4 sm:$0xff]  }
  0x20   : > { %v1819_v25 = vld [vmem:[%s2080_s6 + $0xc4] ss:$16 sps:$4 sm:$0xff]   ;;  %v1821_v26 = vld [vmem:[%s2080_s6 + $0xcc] ss:$16 sps:$4 sm:$0xff]   ;;  %v1823_v27 = vld [vmem:[%s2080_s6 + $0xc0] ss:$16 sps:$4 sm:$0xff]  }
  0x21   : > { %v1824_v28 = vld [vmem:[%s2080_s6 + $0xc8] ss:$16 sps:$4 sm:$0xff]   ;;  %v1825_v29 = vld [vmem:[%s2080_s6 + $0xe4] ss:$16 sps:$4 sm:$0xff]   ;;  %v1827_v30 = vld [vmem:[%s2080_s6 + $0xec] ss:$16 sps:$4 sm:$0xff]  }
  0x22   : > { %882 = vmatpush1.bf16.msra.mxu0 %v1799_v11  ;;  %964 = vmatpush1.bf16.msra.mxu1 %v1800_v12  ;;  %v1829_v31 = vld [vmem:[%s2080_s6 + $0xe0] ss:$16 sps:$4 sm:$0xff]   ;;  %v1830_v32 = vld [vmem:[%s2080_s6 + $0xe8] ss:$16 sps:$4 sm:$0xff]   ;;  %v1831_v33 = vld [vmem:[%s2080_s6 + $0x104] ss:$16 sps:$4 sm:$0xff]  }
  0x23   : > { %883 = vmatprep.subr.bf16.mxu0 %v1801_v13  ;;  %965 = vmatprep.subr.bf16.mxu1 %v1803_v14  ;;  %v1833_v34 = vld [vmem:[%s2080_s6 + $0x10c] ss:$16 sps:$4 sm:$0xff]   ;;  %v1835_v35 = vld [vmem:[%s2080_s6 + $0x100] ss:$16 sps:$4 sm:$0xff]   ;;  %v1836_v36 = vld [vmem:[%s2080_s6 + $0x108] ss:$16 sps:$4 sm:$0xff]  }
  0x24   : > { %v1837_v37 = vld [vmem:[%s2080_s6 + $0x124] ss:$16 sps:$4 sm:$0xff]   ;;  %v1839_v38 = vld [vmem:[%s2080_s6 + $0x12c] ss:$16 sps:$4 sm:$0xff]   ;;  %v2014_v39 = vmov 1966171168  }
  0x25   : > { %v380_v40 = vunpack.c.l.s4 %v2014_v39  ;;  %v1841_v42 = vld [vmem:[%s2080_s6 + $0x120] ss:$16 sps:$4 sm:$0xff]   ;;  %v1842_v43 = vld [vmem:[%s2080_s6 + $0x128] ss:$16 sps:$4 sm:$0xff]   ;;  %v1843_v44 = vld [vmem:[%s2080_s6 + $0x144] ss:$16 sps:$4 sm:$0xff]  }
  0x26   : > { %884 = vmatpush1.bf16.msra.mxu0 %v1805_v15  ;;  %966 = vmatpush1.bf16.msra.mxu1 %v1806_v16  ;;  %v1845_v45 = vld [vmem:[%s2080_s6 + $0x14c] ss:$16 sps:$4 sm:$0xff]   ;;  %v2125_v47 = vshrl.u32 %v382_v41, 7  ;;  %v1847_v48 = vld [vmem:[%s2080_s6 + $0x140] ss:$16 sps:$4 sm:$0xff]   ;;  %p1657_p7 = scmp.ne.s32.totalorder %s2003_s18, 1 }
  0x27   : > { %885 = vmatprep.subr.bf16.mxu0 %v1807_v17  ;;  %967 = vmatprep.subr.bf16.mxu1 %v1809_v18  ;;  %v381_v46 = vunpack.c.0.s8 %v380_v40  ;;  %v1848_v49 = vld [vmem:[%s2080_s6 + $0x148] ss:$16 sps:$4 sm:$0xff]   ;;  %v1849_v50 = vld [vmem:[%s2080_s6 + $0x164] ss:$16 sps:$4 sm:$0xff]   ;;  %v1851_v51 = vld [vmem:[%s2080_s6 + $0x16c] ss:$16 sps:$4 sm:$0xff]  }
  0x28   : > { %v1560_v53 = vld.sshfl [vmem:[%s257_s27] sm:$0x13 pattern:$0x75316420]  ;;  %v1854_v55 = vld [vmem:[%s2080_s6 + $0x168] ss:$16 sps:$4 sm:$0xff]  }
  0x29   : > { %v384_v52 = vsub.s32 %v381_v46, %v2125_v47  ;;  %v1853_v54 = vld [vmem:[%s2080_s6 + $0x160] ss:$16 sps:$4 sm:$0xff]   ;;  %v378_v56 = vcombine.high %v1560_v53, %v1560_v53  ;;  %v1855_v57 = vld [vmem:[%s2080_s6 + $0x184] ss:$16 sps:$4 sm:$0xff]   ;;  %v1857_v58 = vld [vmem:[%s2080_s6 + $0x18c] ss:$16 sps:$4 sm:$0xff]  }
  0x2a   : > { %886 = vmatpush1.bf16.msra.mxu0 %v1811_v19  ;;  %968 = vmatpush1.bf16.msra.mxu1 %v1812_v20  ;;  %v1859_v60 = vld [vmem:[%s2080_s6 + $0x180] ss:$16 sps:$4 sm:$0xff]   ;;  %v1860_v61 = vld [vmem:[%s2080_s6 + $0x188] ss:$16 sps:$4 sm:$0xff]   ;;  %v1861_v62 = vld [vmem:[%s2080_s6 + $0x1a4] ss:$16 sps:$4 sm:$0xff]  }
  0x2b   : > { %887 = vmatprep.subr.bf16.mxu0 %v1813_v21  ;;  %969 = vmatprep.subr.bf16.mxu1 %v1815_v22  ;;  %v392_v59 = vrot.slane %v378_v56, %v384_v52  ;;  %v1863_v63 = vld [vmem:[%s2080_s6 + $0x1ac] ss:$16 sps:$4 sm:$0xff]   ;;  %v1865_v0 = vld [vmem:[%s2080_s6 + $0x1a0] ss:$16 sps:$4 sm:$0xff]   ;;  %v1866_v1 = vld [vmem:[%s2080_s6 + $0x1a8] ss:$16 sps:$4 sm:$0xff]   ;;  %v2157_v12 = vrot.slane %v1560_v53, %v384_v52 }
  0x2c   : > { %v1867_v2 = vld [vmem:[%s2080_s6 + $0x1c4] ss:$16 sps:$4 sm:$0xff]   ;;  %v1869_v3 = vld [vmem:[%s2080_s6 + $0x1cc] ss:$16 sps:$4 sm:$0xff]   ;;  %v1871_v4 = vld [vmem:[%s2080_s6 + $0x1c0] ss:$16 sps:$4 sm:$0xff]  }
  0x2d   : > { %909 = vmatprep.mubr.bf16.mxu0 %v392_v59  ;;  %991 = vmatprep.mubr.bf16.mxu1 %v392_v59  ;;  %v1872_v5 = vld [vmem:[%s2080_s6 + $0x1c8] ss:$16 sps:$4 sm:$0xff]   ;;  %v1873_v6 = vld [vmem:[%s2080_s6 + $0x1e4] ss:$16 sps:$4 sm:$0xff]   ;;  %v1875_v7 = vld [vmem:[%s2080_s6 + $0x1ec] ss:$16 sps:$4 sm:$0xff]  }
  0x2e   : > { %888 = vmatpush1.bf16.msra.mxu0 %v1817_v23  ;;  %970 = vmatpush1.bf16.msra.mxu1 %v1818_v24  ;;  %v1877_v8 = vld [vmem:[%s2080_s6 + $0x1e0] ss:$16 sps:$4 sm:$0xff]   ;;  %v1878_v9 = vld [vmem:[%s2080_s6 + $0x1e8] ss:$16 sps:$4 sm:$0xff]   ;;  %v1881_v10 = vld [vmem:[%s2080_s6 + $0x204] ss:$16 sps:$4 sm:$0xff]  }
  0x2f   : > { %889 = vmatprep.subr.bf16.mxu0 %v1819_v25  ;;  %971 = vmatprep.subr.bf16.mxu1 %v1821_v26  ;;  %v1884_v11 = vld [vmem:[%s2080_s6 + $0x20c] ss:$16 sps:$4 sm:$0xff]   ;;  %v1879_v13 = vld [vmem:[%s2080_s6 + $0x200] ss:$16 sps:$4 sm:$0xff]   ;;  %v1882_v14 = vld [vmem:[%s2080_s6 + $0x208] ss:$16 sps:$4 sm:$0xff]  }
  0x30   : > { %v1887_v15 = vld [vmem:[%s2080_s6 + $0x224] ss:$16 sps:$4 sm:$0xff]   ;;  %v1890_v16 = vld [vmem:[%s2080_s6 + $0x22c] ss:$16 sps:$4 sm:$0xff]   ;;  %v1885_v17 = vld [vmem:[%s2080_s6 + $0x220] ss:$16 sps:$4 sm:$0xff]  }
  0x31   : > { %v1888_v18 = vld [vmem:[%s2080_s6 + $0x228] ss:$16 sps:$4 sm:$0xff]   ;;  %v1893_v19 = vld [vmem:[%s2080_s6 + $0x244] ss:$16 sps:$4 sm:$0xff]   ;;  %v1896_v20 = vld [vmem:[%s2080_s6 + $0x24c] ss:$16 sps:$4 sm:$0xff]  }
  0x32   : > { %890 = vmatpush1.bf16.msra.mxu0 %v1823_v27  ;;  %972 = vmatpush1.bf16.msra.mxu1 %v1824_v28  ;;  %v2015_v21 = vmov 0   ;;  %v1891_v22 = vld [vmem:[%s2080_s6 + $0x240] ss:$16 sps:$4 sm:$0xff]   ;;  %v1894_v23 = vld [vmem:[%s2080_s6 + $0x248] ss:$16 sps:$4 sm:$0xff]   ;;  %vm1477_vm0 = vcmask (!%p1657_p7), 74752  }
  0x33   : > { %891 = vmatprep.subr.bf16.mxu0 %v1825_v29  ;;  %973 = vmatprep.subr.bf16.mxu1 %v1827_v30  ;;  %v1899_v24 = vld [vmem:[%s2080_s6 + $0x264] ss:$16 sps:$4 sm:$0xff]   ;;  %v1902_v25 = vld [vmem:[%s2080_s6 + $0x26c] ss:$16 sps:$4 sm:$0xff]   ;;  %v1897_v26 = vld [vmem:[%s2080_s6 + $0x260] ss:$16 sps:$4 sm:$0xff]  }
  0x34   : > { %v1900_v27 = vld [vmem:[%s2080_s6 + $0x268] ss:$16 sps:$4 sm:$0xff]   ;;  %v1905_v28 = vld [vmem:[%s2080_s6 + $0x284] ss:$16 sps:$4 sm:$0xff]   ;;  %v1908_v29 = vld [vmem:[%s2080_s6 + $0x28c] ss:$16 sps:$4 sm:$0xff]  }
  0x35   : > { %v1903_v30 = vld [vmem:[%s2080_s6 + $0x280] ss:$16 sps:$4 sm:$0xff]   ;;  %v1918_v39 = vld [vmem:[%s2080_s6 + $0x2c8] ss:$16 sps:$4 sm:$0xff]   ;;  %v1923_v40 = vld [vmem:[%s2080_s6 + $0x2e4] ss:$16 sps:$4 sm:$0xff]  }
  0x36   : > { %892 = vmatpush1.bf16.msra.mxu0 %v1829_v31  ;;  %974 = vmatpush1.bf16.msra.mxu1 %v1830_v32  ;;  %v1906_v31 = vld [vmem:[%s2080_s6 + $0x288] ss:$16 sps:$4 sm:$0xff]   ;;  %v1911_v32 = vld [vmem:[%s2080_s6 + $0x2a4] ss:$16 sps:$4 sm:$0xff]   ;;  %v1926_v41 = vld [vmem:[%s2080_s6 + $0x2ec] ss:$16 sps:$4 sm:$0xff]  }
  0x37   : > { %893 = vmatprep.subr.bf16.mxu0 %v1831_v33  ;;  %975 = vmatprep.subr.bf16.mxu1 %v1833_v34  ;;  %v1914_v33 = vld [vmem:[%s2080_s6 + $0x2ac] ss:$16 sps:$4 sm:$0xff]   ;;  %v1909_v34 = vld [vmem:[%s2080_s6 + $0x2a0] ss:$16 sps:$4 sm:$0xff]  }
  0x3a   : > { %894 = vmatpush1.bf16.msra.mxu0 %v1835_v35  ;;  %976 = vmatpush1.bf16.msra.mxu1 %v1836_v36  ;;  %v1912_v35 = vld [vmem:[%s2080_s6 + $0x2a8] ss:$16 sps:$4 sm:$0xff]   ;;  %v1917_v36 = vld [vmem:[%s2080_s6 + $0x2c4] ss:$16 sps:$4 sm:$0xff]  }
  0x3b   : > { %895 = vmatprep.subr.bf16.mxu0 %v1837_v37  ;;  %977 = vmatprep.subr.bf16.mxu1 %v1839_v38  ;;  %v1920_v37 = vld [vmem:[%s2080_s6 + $0x2cc] ss:$16 sps:$4 sm:$0xff]   ;;  %v1915_v38 = vld [vmem:[%s2080_s6 + $0x2c0] ss:$16 sps:$4 sm:$0xff]  }
  0x3e   : > { %896 = vmatpush1.bf16.msra.mxu0 %v1841_v42  ;;  %978 = vmatpush1.bf16.msra.mxu1 %v1842_v43  ;;  %v1921_v42 = vld [vmem:[%s2080_s6 + $0x2e0] ss:$16 sps:$4 sm:$0xff]   ;;  %v1924_v43 = vld [vmem:[%s2080_s6 + $0x2e8] ss:$16 sps:$4 sm:$0xff]  }
  0x3f   : > { %897 = vmatprep.subr.bf16.mxu0 %v1843_v44  ;;  %979 = vmatprep.subr.bf16.mxu1 %v1845_v45  ;;  %v393_v44 = vcombine.high %v2157_v12, %v2157_v12  ;;  %v2016_v45 = vmov 1983009808  }
  0x40   : > { %v1048_v46 = vunpack.c.l.s4 %v2016_v45 }
  0x42   : > { %898 = vmatpush1.bf16.msra.mxu0 %v1847_v48  ;;  %980 = vmatpush1.bf16.msra.mxu1 %v1848_v49  ;;  %v1049_v48 = vunpack.c.0.s8 %v1048_v46 }
  0x43   : > { %899 = vmatprep.subr.bf16.mxu0 %v1849_v50  ;;  %981 = vmatprep.subr.bf16.mxu1 %v1851_v51 }
  0x44   : > { %v2194_v51 = vsub.s32 %v1049_v48, %v2125_v47 }
  0x46   : > { %900 = vmatpush1.bf16.msra.mxu0 %v1853_v54  ;;  %982 = vmatpush1.bf16.msra.mxu1 %v1854_v55 }
  0x47   : > { %901 = vmatprep.subr.bf16.mxu0 %v1855_v57  ;;  %983 = vmatprep.subr.bf16.mxu1 %v1857_v58 }
  0x4a   : > { %902 = vmatpush1.bf16.msra.mxu0 %v1859_v60  ;;  %984 = vmatpush1.bf16.msra.mxu1 %v1860_v61 }
  0x4b   : > { %903 = vmatprep.subr.bf16.mxu0 %v1861_v62  ;;  %985 = vmatprep.subr.bf16.mxu1 %v1863_v63  ;;  %v272_v62 = vld [vmem:[#allocation2] sm:$0xff] }
  0x4e   : > { %904 = vmatpush1.bf16.msra.mxu0 %v1865_v0  ;;  %986 = vmatpush1.bf16.msra.mxu1 %v1866_v1  ;;  %v1927_v1 = vld [vmem:[%s2349_s3 + $0x40] sm:$0xff] (!%p1657_p7)  }
  0x4f   : > { %905 = vmatprep.subr.bf16.mxu0 %v1867_v2  ;;  %987 = vmatprep.subr.bf16.mxu1 %v1869_v3  ;;  %v1928_v2 = vld [vmem:[%s2349_s3 + $0xc0] sm:$0xff] (!%p1657_p7)  }
  0x50   : > { %v1929_v3 = vld [vmem:[%s2349_s3] sm:$0xff] (!%p1657_p7)  }
  0x52   : > { %906 = vmatpush1.bf16.msra.mxu0 %v1871_v4  ;;  %988 = vmatpush1.bf16.msra.mxu1 %v1872_v5  ;;  %v1930_v4 = vld [vmem:[%s2349_s3 + $0x80] sm:$0xff] (!%p1657_p7)   ;;  %v1931_v5 = vld [vmem:[%s2349_s3 + $0x48] sm:$0xff] (!%p1657_p7)  }
  0x53   : > { %907 = vmatprep.subr.bf16.mxu0 %v1873_v6  ;;  %989 = vmatprep.subr.bf16.mxu1 %v1875_v7  ;;  %v1932_v6 = vld [vmem:[%s2349_s3 + $0xc8] sm:$0xff] (!%p1657_p7)  }
  0x54   : > { %v1933_v7 = vld [vmem:[%s2349_s3 + $0x8] sm:$0xff] (!%p1657_p7)  }
  0x56   : > { %908 = vmatpush1.bf16.msra.mxu0 %v1877_v8  ;;  %990 = vmatpush1.bf16.msra.mxu1 %v1878_v9  ;;  %v1934_v8 = vld [vmem:[%s2349_s3 + $0x88] sm:$0xff] (!%p1657_p7)   ;;  %v1935_v9 = vld [vmem:[%s2349_s3 + $0x50] sm:$0xff] (!%p1657_p7)  }
  0x57   : > { %918 = vmatprep.subr.bf16.mxu0 %v1881_v10  ;;  %1000 = vmatprep.subr.bf16.mxu1 %v1884_v11  ;;  %v1936_v10 = vld [vmem:[%s2349_s3 + $0xd0] sm:$0xff] (!%p1657_p7)  }
  0x58   : > { %v1937_v11 = vld [vmem:[%s2349_s3 + $0x10] sm:$0xff] (!%p1657_p7)  }
  0x59   : > { %910 = vmatmul.mubr.bf16.vlgmr.msra.gmra.mrb[0].mxu0 %v2157_v12  ;;  %992 = vmatmul.mubr.bf16.vlgmr.msra.gmra.mrb[0].mxu1 %v2157_v12  ;;  %v1938_v12 = vld [vmem:[%s2349_s3 + $0x90] sm:$0xff] (!%p1657_p7)  }
  0x5a   : > { %919 = vmatpush1.bf16.msra.mxu0 %v1879_v13  ;;  %1001 = vmatpush1.bf16.msra.mxu1 %v1882_v14  ;;  %v1939_v13 = vld [vmem:[%s2349_s3 + $0x58] sm:$0xff] (!%p1657_p7)  }
  0x5b   : > { %920 = vmatprep.subr.bf16.mxu0 %v1887_v15  ;;  %1002 = vmatprep.subr.bf16.mxu1 %v1890_v16  ;;  %v1940_v14 = vld [vmem:[%s2349_s3 + $0xd8] sm:$0xff] (!%p1657_p7)  }
  0x5c   : > { %950 = vmatprep.mubr.bf16.mxu0 %v2015_v21  ;;  %1032 = vmatprep.mubr.bf16.mxu1 %v2015_v21  ;;  %v1941_v15 = vld [vmem:[%s2349_s3 + $0x18] sm:$0xff] (!%p1657_p7)   ;;  %v1947_v21 = vld [vmem:[%s2349_s3 + $0x68] sm:$0xff] (!%p1657_p7)  }
  0x5d   : > { %v1942_v16 = vld [vmem:[%s2349_s3 + $0x98] sm:$0xff] (!%p1657_p7)  }
  0x5e   : > { %921 = vmatpush1.bf16.msra.mxu0 %v1885_v17  ;;  %1003 = vmatpush1.bf16.msra.mxu1 %v1888_v18  ;;  %v1943_v17 = vld [vmem:[%s2349_s3 + $0x60] sm:$0xff] (!%p1657_p7)  }
  0x5f   : > { %922 = vmatprep.subr.bf16.mxu0 %v1893_v19  ;;  %1004 = vmatprep.subr.bf16.mxu1 %v1896_v20  ;;  %v1944_v18 = vld [vmem:[%s2349_s3 + $0xe0] sm:$0xff] (!%p1657_p7)  }
  0x60   : > { %v1945_v19 = vld [vmem:[%s2349_s3 + $0x20] sm:$0xff] (!%p1657_p7)  }
  0x61   : > { %v1946_v20 = vld [vmem:[%s2349_s3 + $0xa0] sm:$0xff] (!%p1657_p7)  }
  0x62   : > { %923 = vmatpush1.bf16.msra.mxu0 %v1891_v22  ;;  %1005 = vmatpush1.bf16.msra.mxu1 %v1894_v23  ;;  %v1948_v22 = vld [vmem:[%s2349_s3 + $0xe8] sm:$0xff] (!%p1657_p7)  }
  0x63   : > { %924 = vmatprep.subr.bf16.mxu0 %v1899_v24  ;;  %1006 = vmatprep.subr.bf16.mxu1 %v1902_v25  ;;  %v1949_v23 = vld [vmem:[%s2349_s3 + $0x28] sm:$0xff] (!%p1657_p7)   ;;  %v1951_v25 = vld [vmem:[%s2349_s3 + $0x70] sm:$0xff] (!%p1657_p7)  }
  0x64   : > { %v1950_v24 = vld [vmem:[%s2349_s3 + $0xa8] sm:$0xff] (!%p1657_p7)  }
  0x66   : > { %925 = vmatpush1.bf16.msra.mxu0 %v1897_v26  ;;  %1007 = vmatpush1.bf16.msra.mxu1 %v1900_v27  ;;  %v1952_v26 = vld [vmem:[%s2349_s3 + $0xf0] sm:$0xff] (!%p1657_p7)  }
  0x67   : > { %926 = vmatprep.subr.bf16.mxu0 %v1905_v28  ;;  %1008 = vmatprep.subr.bf16.mxu1 %v1908_v29  ;;  %v1953_v27 = vld [vmem:[%s2349_s3 + $0x30] sm:$0xff] (!%p1657_p7)   ;;  %v1074_v28 = vsub.s32 (!%p1657_p7), 0, %v2125_v47 }
  0x68   : > { %v1954_v29 = vld [vmem:[%s2349_s3 + $0xb0] sm:$0xff] (!%p1657_p7)  }
  0x6a   : > { %927 = vmatpush1.bf16.msra.mxu0 %v1903_v30  ;;  %1009 = vmatpush1.bf16.msra.mxu1 %v1906_v31  ;;  %v1078_v30 = vsub.s32 (!%p1657_p7), 1, %v2125_v47  ;;  %v1955_v31 = vld [vmem:[%s2349_s3 + $0x78] sm:$0xff] (!%p1657_p7)  }
  0x6b   : > { %928 = vmatprep.subr.bf16.mxu0 %v1911_v32  ;;  %1010 = vmatprep.subr.bf16.mxu1 %v1914_v33  ;;  %v1082_v32 = vsub.s32 (!%p1657_p7), 2, %v2125_v47  ;;  %v1956_v33 = vld [vmem:[%s2349_s3 + $0xf8] sm:$0xff] (!%p1657_p7)  }
  0x6e   : > { %929 = vmatpush1.bf16.msra.mxu0 %v1909_v34  ;;  %1011 = vmatpush1.bf16.msra.mxu1 %v1912_v35  ;;  %v1086_v34 = vsub.s32 (!%p1657_p7), 3, %v2125_v47  ;;  %v1957_v35 = vld [vmem:[%s2349_s3 + $0x38] sm:$0xff] (!%p1657_p7)  }
  0x6f   : > { %930 = vmatprep.subr.bf16.mxu0 %v1917_v36  ;;  %1012 = vmatprep.subr.bf16.mxu1 %v1920_v37  ;;  %v1958_v36 = vld [vmem:[%s2349_s3 + $0xb8] sm:$0xff] (!%p1657_p7)   ;;  %v1070_v37 = vld [vmem:[%s2348_s2] sm:$0xf] (!%p1657_p7) }
  0x70   : > { %v1087_v47 = vrot.slane (!%p1657_p7), %v1070_v37, %v1086_v34 }
  0x72   : > { %931 = vmatpush1.bf16.msra.mxu0 %v1915_v38  ;;  %1013 = vmatpush1.bf16.msra.mxu1 %v1918_v39  ;;  %v1075_v38 = vrot.slane (!%p1657_p7), %v1070_v37, %v1074_v28  ;;  %v1079_v39 = vrot.slane (!%p1657_p7), %v1070_v37, %v1078_v30 }
  0x73   : > { %932 = vmatprep.subr.bf16.mxu0 %v1923_v40  ;;  %1014 = vmatprep.subr.bf16.mxu1 %v1926_v41  ;;  %v1083_v40 = vrot.slane (!%p1657_p7), %v1070_v37, %v1082_v32 }
  0x74   : > { %v1088_v41 = vcombine.low (!%p1657_p7), %v1075_v38, %v1079_v39 }
  0x76   : > { %933 = vmatpush1.bf16.msra.mxu0 %v1921_v42  ;;  %1015 = vmatpush1.bf16.msra.mxu1 %v1924_v43  ;;  %v1089_v42 = vcombine.low (!%p1657_p7), %v1083_v40, %v1087_v47  ;;  %v1096_v43 = vrot.slane (!%p1657_p7), %v1088_v41, %v2194_v51 }
  0x77   : > { %1696 = vmatprep.subr.bf16.mxu0 (!%p1657_p7), %v1927_v1  ;;  %1718 = vmatprep.subr.bf16.mxu1 (!%p1657_p7), %v1928_v2 }
  0x79   : > { %951 = vmatmul.mubr.bf16.vlgmr.msra.gmra.mrb[0].mxu0 %v393_v44  ;;  %1033 = vmatmul.mubr.bf16.vlgmr.msra.gmra.mrb[0].mxu1 %v393_v44  ;;  %v1103_v44 = vrot.slane (!%p1657_p7), %v1089_v42, %v2194_v51 }
  0x7a   : > { %1697 = vmatpush3.bf16.msra.mxu0 (!%p1657_p7), %v1929_v3  ;;  %1719 = vmatpush3.bf16.msra.mxu1 (!%p1657_p7), %v1930_v4 }
  0x7b   : > { %1698 = vmatprep.subr.bf16.mxu0 (!%p1657_p7), %v1931_v5  ;;  %1720 = vmatprep.subr.bf16.mxu1 (!%p1657_p7), %v1932_v6  ;;  %v1104_v46 = vcombine.low (!%p1657_p7), %v1096_v43, %v1103_v44 }
  0x7e   : > { %1699 = vmatpush3.bf16.msra.mxu0 (!%p1657_p7), %v1933_v7  ;;  %1721 = vmatpush3.bf16.msra.mxu1 (!%p1657_p7), %v1934_v8 }
  0x7f   : > { %1700 = vmatprep.subr.bf16.mxu0 (!%p1657_p7), %v1935_v9  ;;  %1722 = vmatprep.subr.bf16.mxu1 (!%p1657_p7), %v1936_v10 }
  0x82   : > { %1701 = vmatpush3.bf16.msra.mxu0 (!%p1657_p7), %v1937_v11  ;;  %1723 = vmatpush3.bf16.msra.mxu1 (!%p1657_p7), %v1938_v12 }
  0x83   : > { %1702 = vmatprep.subr.bf16.mxu0 (!%p1657_p7), %v1939_v13  ;;  %1724 = vmatprep.subr.bf16.mxu1 (!%p1657_p7), %v1940_v14 }
  0x86   : > { %1703 = vmatpush3.bf16.msra.mxu0 (!%p1657_p7), %v1941_v15  ;;  %1725 = vmatpush3.bf16.msra.mxu1 (!%p1657_p7), %v1942_v16 }
  0x87   : > { %1704 = vmatprep.subr.bf16.mxu0 (!%p1657_p7), %v1943_v17  ;;  %1726 = vmatprep.subr.bf16.mxu1 (!%p1657_p7), %v1944_v18 }
  0x8a   : > { %1705 = vmatpush3.bf16.msra.mxu0 (!%p1657_p7), %v1945_v19  ;;  %1727 = vmatpush3.bf16.msra.mxu1 (!%p1657_p7), %v1946_v20 }
  0x8b   : > { %1706 = vmatprep.subr.bf16.mxu0 (!%p1657_p7), %v1947_v21  ;;  %1728 = vmatprep.subr.bf16.mxu1 (!%p1657_p7), %v1948_v22 }
  0x8e   : > { %1707 = vmatpush3.bf16.msra.mxu0 (!%p1657_p7), %v1949_v23  ;;  %1729 = vmatpush3.bf16.msra.mxu1 (!%p1657_p7), %v1950_v24 }
  0x8f   : > { %1708 = vmatprep.subr.bf16.mxu0 (!%p1657_p7), %v1951_v25  ;;  %1730 = vmatprep.subr.bf16.mxu1 (!%p1657_p7), %v1952_v26 }
  0x92   : > { %1709 = vmatpush3.bf16.msra.mxu0 (!%p1657_p7), %v1953_v27  ;;  %1731 = vmatpush3.bf16.msra.mxu1 (!%p1657_p7), %v1954_v29 }
  0x93   : > { %1710 = vmatprep.subr.bf16.mxu0 (!%p1657_p7), %v1955_v31  ;;  %1732 = vmatprep.subr.bf16.mxu1 (!%p1657_p7), %v1956_v33 }
  0x96   : > { %1711 = vmatpush3.bf16.msra.mxu0 (!%p1657_p7), %v1957_v35  ;;  %1733 = vmatpush3.bf16.msra.mxu1 (!%p1657_p7), %v1958_v36 }
 0x14c   : > { %v952_v49 = vpop.f32.mrb[0].mxu0  ;;  %v1034_v50 = vpop.f32.mrb[0].mxu1 }
 0x14d   : > { %v954_v52 = vpop.f32.mrb[1].mxu0  ;;  %v1036_v53 = vpop.f32.mrb[1].mxu1 }
 0x14e   : > { %v1045_v54 = vcombine.low %v952_v49, %v954_v52  ;;  %v1046_v55 = vcombine.low %v1034_v50, %v1036_v53  ;;  %v956_v56 = vpop.f32.mrb[2].mxu0  ;;  %v1038_v57 = vpop.f32.mrb[2].mxu1 }
 0x14f   : > { %v957_v58 = vpop.f32.mrb[3].mxu0  ;;  %v1039_v59 = vpop.f32.mrb[3].mxu1 }
 0x150   : > { %v1053_v60 = vrot.slane %v1045_v54, %v2194_v51  ;;  %v1060_v61 = vrot.slane %v1046_v55, %v2194_v51  ;;  %1068 = sbr.rel (%p1657_p7) target bundleno = 581 (0x245), region = 48 }
 0x152   : > { %v1061_v63 = vcombine.low %v1053_v60, %v1060_v61  ;;  %v1658_v61 = vld [vmem:[%s2350_s4] ss:$0 sm:$0xff] (!%p1657_p7) }
 0x154   : > { %v1063_v0 = vadd.f32 %v1061_v63, %v272_v62 }
 0x156   : > { %1064 = vst [vmem:[#allocation2] sm:$0xff] %v1063_v0 }
 0x15d   : > { %v1069_v45 = vld [vmem:[#allocation2] sm:$0xff] }
 0x15e   : > { %v1106_v48 = vadd.f32 %v1104_v46, %v1069_v45 }
 0x160   : > { %v1107_v49 = vmax.f32 %v1106_v48, 0.0 }
 0x162   : > { %v1116_v50 = vrot.slane %v1107_v49, %v2194_v51  ;;  %v1109_v52 = vcombine.high %v1107_v49, %v1107_v49 }
 0x164   : > { %v1124_v53 = vcombine.high %v1116_v50, %v1116_v50  ;;  %v1123_v54 = vrot.slane %v1109_v52, %v2194_v51  ;;  %v1130_v55 = vpack.c.bf16 %v1116_v50, %v1116_v50 }
 0x166   : > { %v1131_v56 = vpack.c.bf16 %v1124_v53, %v1124_v53  ;;  %v1125_v57 = vcombine.high %v1123_v54, %v1123_v54  ;;  %v1132_v58 = vpack.c.bf16 %v1123_v54, %v1123_v54 }
 0x168   : > { %1429 = vmatprep.mubr.bf16.mxu0 %v1131_v56  ;;  %v1133_v59 = vpack.c.bf16 %v1125_v57, %v1125_v57 }
 0x169   : > { %1430 = vmatmul.mubr.bf16.vlgmr.msra.gmra.mrb[0].mxu0 %v1130_v55 }
 0x16a   : > { %1469 = vmatprep.mubr.bf16.mxu1 %v1133_v59 }
 0x16b   : > { %1470 = vmatmul.mubr.bf16.vlgmr.msra.gmra.mrb[0].mxu1 %v1132_v58 }
 0x23c   : > { %v1712_v60 = vpop.f32.mrb[0].mxu0 }
 0x23d   : > { %v1713_v62 = vpop.f32.mrb[1].mxu0 }
 0x23e   : > { %v1734_v63 = vpop.f32.mrb[0].mxu1  ;;  %v1714_v0 = vadd.f32 %v1713_v62, %v1712_v60  ;;  %v1715_v1 = vpop.f32.mrb[2].mxu0 }
 0x23f   : > { %v1735_v2 = vpop.f32.mrb[1].mxu1  ;;  %v1716_v51 = vpop.f32.mrb[3].mxu0 }
 0x240   : > { %v1432_v3 = vadd.f32 %v1714_v0, %v1658_v61  ;;  %v1736_v4 = vadd.f32 %v1735_v2, %v1734_v63  ;;  %v1737_v5 = vpop.f32.mrb[2].mxu1 }
 0x241   : > { %v1738_v6 = vpop.f32.mrb[3].mxu1 }
 0x242   : > { %v1472_v7 = vadd.f32 %v1736_v4, %v1432_v3 }
 0x244   : > { %1478 = vst.msk [vmem:[#allocation3] sm:$0x3] %vm1477_vm0, %v1472_v7 }
 0x245 PF: > { %p2311_p8 = scmp.eq.s32.totalorder %s1553_s21, 1  ;;  %s2017_s15 = smov [#allocation3]  }
 0x246   : > { %s1488_s16 = sshll.u32 %s2017_s15, 4  ;;  %s1489_s16 = int_to_ptr.vmem [resolvable:$true] %s1488_s16 }
 0x247   : > { %s1959_s17 = scalar_lea.vmem %s1489_s16, 32  ;;  %p1966_p12 = scmp.lt.s32.totalorder %s1489_s16, %s1489_s16 }
 0x248   : > { %p1960_p9 = scmp.ne.s32.totalorder %s1489_s16, %s1959_s17  ;;  %p1967_p13 = scmp.lt.s32.totalorder %s1959_s17, %s1959_s17 }
 0x24a   : > { %p1961_p10 = pnand %p1960_p9, %p2311_p8  ;;  %p1968_p0 = por %p1967_p13, %p1966_p12 }
 0x24c   : > { %p1962_p11 = pneg %p1961_p10 }
 0x24e   : > { %p1969_p1 = pnand %p1968_p0, %p1962_p11 }
 0x250   : > { %1972 = shalt.err (!%p1969_p1)
}
 0x251   : > { %s1973_s21 = scalar_lea.hbm %s2351_s5, 32 }
 0x252   : > { %p1974_p2 = scmp.ne.s32.totalorder %s2351_s5, %s1973_s21  ;;  %p1979_p5 = scmp.lt.u32.totalorder %s1973_s21, %s2351_s5 }
 0x254   : > { %p1975_p3 = pnand %p1974_p2, %p2311_p8 }
 0x256   : > { %p1976_p4 = pneg %p1975_p3 }
 0x258   : > { %p1981_p6 = pnand %p1979_p5, %p1976_p4 }
 0x25a   : > { %1984 = shalt.err (!%p1981_p6)
}
 0x25b   : > { %1749 = dma.vmem_to_hbm [thread:$0]  (%p2311_p8), %s1489_s16, 32, %s2351_s5, [#allocation4]  }
 0x25c   : > { %1998 = dma.done.wait (%p2311_p8), [#allocation4], 32  }
 0x25d   : > { %2000 = vsyncadd (%p2311_p8), [#allocation4], 4294967264 }
 0x25e PF: > { %s16_s20 = sadd.s32 1, %s2011_s20   ;;  %s2353_s18 = smov %s2007_s19 }
 0x25f   : > { %p13_p7 = scmp.ge.s32.totalorder %s16_s20, 4   ;;  %s2354_s19 = smov %s2356_s22 }
 0x261   :  { %15 = sbr.rel (!%p13_p7) target bundleno = 2 (0x2), region = 79 }
 0x268   :  { %1501 = vsyncpa [#allocation4], 1 }
 0x269   :  { %1503 = vsyncpa [#allocation4 + $0x1], 1 }

</bundles_post_ra>
